<compile_context>
chip_gen: v7x
topology: tpu7x:2x2x1
jax: 0.10.0
libtpu: 0.0.40
codegen_flags: <defaults>
</compile_context>

<pallas_src>
import jax
import jax.numpy as jnp
from jax.experimental import pallas as pl
from jax.experimental.pallas import tpu as pltpu


def _bilinear_matrix(n_in: int, n_out: int) -> jnp.ndarray:
    """(n_out, n_in) matrix M such that M @ v == 1D bilinear upsample of v
    with align_corners=True (PyTorch nn.Upsample semantics)."""
    i = jnp.arange(n_out, dtype=jnp.float32)
    denom = max(n_out - 1, 1)                      # guard n_out == 1
    src = i * (n_in - 1) / denom
    i0 = jnp.clip(jnp.floor(src).astype(jnp.int32), 0, n_in - 1)
    i1 = jnp.clip(i0 + 1, 0, n_in - 1)
    w1 = src - i0.astype(jnp.float32)
    w0 = 1.0 - w1
    cols = jnp.arange(n_in, dtype=jnp.int32)
    a = (w0[:, None] * (cols[None, :] == i0[:, None]).astype(jnp.float32)
         + w1[:, None] * (cols[None, :] == i1[:, None]).astype(jnp.float32))
    return a.astype(jnp.float32)


# -------- pass 1: fused 1x1 conv + separable bilinear upsample + BN stats ----
def _upconv_fused_kernel(x_ref, wc_ref, aht_ref, awt_ref, y_ref, stats_ref,
                         z_scr):
    # x_ref    : (C, H*W)   input for this batch element (channels x pixels)
    # wc_ref   : (O, C)     1x1 conv weight
    # aht_ref  : (H, P)     A_h^T (height upsample)
    # awt_ref  : (W, Q)     A_w^T (width upsample)
    # y_ref    : (O, P, Q)  upsampled pre-BN activations for this batch element
    # stats_ref: (O, 2)     per-channel [sum, sum_sq] for this batch element
    # z_scr    : (O, H, W)  VMEM scratch holding the relaid-out conv output
    H, P = aht_ref.shape
    W, Q = awt_ref.shape
    O = wc_ref.shape[0]
    cdt = x_ref.dtype

    # 1x1 conv at LOW resolution: one lane-dense (O, C) @ (C, H*W) MXU matmul.
    z = jnp.dot(wc_ref[...], x_ref[...],
                preferred_element_type=jnp.float32).astype(cdt)        # (O, H*W)

    # Lane -> sublane relayout of the conv output via H static slice-stores
    # into VMEM scratch (cheap; replaces the previous HBM round trip of z).
    for h in range(H):
        z_scr[:, h, :] = z[:, h * W:(h + 1) * W]

    # Height upsample: one batched (O*W, H) @ (H, P) MXU matmul.
    zt = jnp.swapaxes(z_scr[...], 1, 2).reshape(O * W, H)              # (O*W, H)
    uh = jnp.dot(zt, aht_ref[...],
                 preferred_element_type=jnp.float32)                   # (O*W, P)

    # Width upsample: one batched (O*P, W) @ (W, Q) MXU matmul; the result is
    # already in channel-major (O, P, Q) order -> no trailing transpose.
    ut = jnp.swapaxes(uh.reshape(O, W, P), 1, 2).reshape(O * P, W).astype(cdt)
    y = jnp.dot(ut, awt_ref[...],
                preferred_element_type=jnp.float32).reshape(O, P, Q)   # f32

    y_ref[...] = y.astype(y_ref.dtype)

    # Per-channel partial BatchNorm statistics as wide f32 vector reductions.
    s = jnp.sum(jnp.sum(y, axis=2), axis=1, keepdims=True)             # (O, 1)
    ss = jnp.sum(jnp.sum(y * y, axis=2), axis=1, keepdims=True)        # (O, 1)
    stats_ref[...] = jnp.concatenate([s, ss], axis=1)                  # (O, 2)


# -------- pass 2: lane-dense fused BatchNorm + ReLU epilogue -----------------
def _bn_relu_kernel(y_ref, scale_ref, shift_ref, out_ref):
    # y_ref: (O, P*Q), scale_ref/shift_ref: (O, 1), out_ref: (O, P*Q)
    y = y_ref[...].astype(jnp.float32)
    out_ref[...] = jnp.maximum(y * scale_ref[...] + shift_ref[...],
                               0.0).astype(out_ref.dtype)


def up_conv(x, w_conv, gamma, beta, scale_factor=2, eps=1e-5,
            compute_dtype=jnp.float32):
    """UpConv forward (bilinear branch). x: (N, C_in, H, W) float32 NCHW."""
    N, C, H, W = x.shape
    O = w_conv.shape[0]
    P, Q = H * scale_factor, W * scale_factor
    cdt = compute_dtype

    aht = _bilinear_matrix(H, P).T.astype(cdt)   # (H, P)
    awt = _bilinear_matrix(W, Q).T.astype(cdt)   # (W, Q)
    wc = w_conv.reshape(O, C).astype(cdt)        # (O, C) (accepts (O,C,1,1))
    x2 = x.reshape(N, C, H * W).astype(cdt)      # free metadata reshape

    cp = pltpu.CompilerParams(dimension_semantics=("parallel",),
                              vmem_limit_bytes=32 * 1024 * 1024)

    # ---- pass 1: conv (low res) + bilinear upsample + per-batch BN stats ----
    y, stats = pl.pallas_call(
        _upconv_fused_kernel,
        grid=(N,),
        in_specs=[pl.BlockSpec((None, C, H * W), lambda n: (n, 0, 0)),
                  pl.BlockSpec((O, C), lambda n: (0, 0)),
                  pl.BlockSpec((H, P), lambda n: (0, 0)),
                  pl.BlockSpec((W, Q), lambda n: (0, 0))],
        out_specs=[pl.BlockSpec((None, O, P, Q), lambda n: (n, 0, 0, 0)),
                   pl.BlockSpec((None, O, 2), lambda n: (n, 0, 0))],
        out_shape=[jax.ShapeDtypeStruct((N, O, P, Q), cdt),
                   jax.ShapeDtypeStruct((N, O, 2), jnp.float32)],
        scratch_shapes=[pltpu.VMEM((O, H, W), cdt)],
        compiler_params=cp,
    )(x2, wc, aht, awt)

    # ---- tiny (O-element) BN statistics -> scale/shift, done once -----------
    tot = jnp.sum(stats, axis=0)                        # (O, 2)
    cnt = jnp.float32(N * P * Q)
    mean = tot[:, 0] / cnt
    var = jnp.maximum(tot[:, 1] / cnt - mean * mean, 0.0)   # guard cancellation
    scale = gamma.astype(jnp.float32) * jax.lax.rsqrt(var + eps)
    shift = beta.astype(jnp.float32) - mean * scale

    # ---- pass 2: fused BN + ReLU on a lane-dense (O, P*Q) view --------------
    y_flat = y.reshape(N, O, P * Q)                     # free metadata reshape
    out = pl.pallas_call(
        _bn_relu_kernel,
        grid=(N,),
        in_specs=[pl.BlockSpec((None, O, P * Q), lambda n: (n, 0, 0)),
                  pl.BlockSpec((O, 1), lambda n: (0, 0)),
                  pl.BlockSpec((O, 1), lambda n: (0, 0))],
        out_specs=pl.BlockSpec((None, O, P * Q), lambda n: (n, 0, 0)),
        out_shape=jax.ShapeDtypeStruct((N, O, P * Q), jnp.float32),
        compiler_params=cp,
    )(y_flat, scale.reshape(O, 1), shift.reshape(O, 1))

    return out.reshape(N, O, P, Q)


def _reference(x, w_conv, gamma, beta, scale_factor=2, eps=1e-5):
    """Plain-JAX reference of the same forward pass (for sanity checking)."""
    N, C, H, W = x.shape
    ah = _bilinear_matrix(H, H * scale_factor)
    aw = _bilinear_matrix(W, W * scale_factor)
    up = jnp.einsum('ph,nchw->ncpw', ah, x)
    up = jnp.einsum('qw,ncpw->ncpq', aw, up)
    y = jnp.einsum('oc,ncpq->nopq', w_conv, up)
    mean = jnp.mean(y, axis=(0, 2, 3), keepdims=True)
    var = jnp.mean((y - mean) ** 2, axis=(0, 2, 3), keepdims=True)
    yn = (y - mean) * jax.lax.rsqrt(var + eps)
    out = yn * gamma.reshape(1, -1, 1, 1) + beta.reshape(1, -1, 1, 1)
    return jnp.maximum(out, 0.0)


if __name__ == "__main__":
    N, C_in, C_out, H, W = 2, 4, 8, 16, 16
    key = jax.random.PRNGKey(0)
    kx, kw, kg, kb = jax.random.split(key, 4)

    x = jax.random.normal(kx, (N, C_in, H, W), dtype=jnp.float32)
    # Conv2d(C_in, C_out, 1, bias=False) weight (C_out, C_in, 1, 1) -> (C_out, C_in)
    w_conv = jax.random.normal(kw, (C_out, C_in), dtype=jnp.float32) / jnp.sqrt(C_in)
    gamma = jax.random.uniform(kg, (C_out,), dtype=jnp.float32,
                               minval=0.5, maxval=1.5)
    beta = 0.1 * jax.random.normal(kb, (C_out,), dtype=jnp.float32)

    ref = _reference(x, w_conv, gamma, beta, scale_factor=2)

    # f32 matmul path: bitwise-close to the reference.
    out = jax.block_until_ready(up_conv(x, w_conv, gamma, beta, scale_factor=2))
    assert out.shape == (N, C_out, 2 * H, 2 * W), out.shape
    err = float(jnp.max(jnp.abs(out - ref)))
    assert err < 1e-3, f"max abs error {err}"

    # bf16 MXU-input path (f32 accumulation / f32 BN epilogue): loose tolerance.
    out_bf16 = jax.block_until_ready(
        up_conv(x, w_conv, gamma, beta, scale_factor=2,
                compute_dtype=jnp.bfloat16))
    err_bf16 = float(jnp.max(jnp.abs(out_bf16 - ref)))
    assert err_bf16 < 0.25, f"bf16 max abs error {err_bf16}"

    print("KERNEL_OK")
</pallas_src>

<mosaic_0001>
module attributes {stable_mosaic.version = 11 : i64} {
  func.func @_upconv_fused_kernel(%arg0: i32, %arg1: memref<1x4x256xf32, #tpu.memory_space<vmem>>, %arg2: memref<8x4xf32, #tpu.memory_space<vmem>>, %arg3: memref<16x32xf32, #tpu.memory_space<vmem>>, %arg4: memref<16x32xf32, #tpu.memory_space<vmem>>, %arg5: memref<1x8x32x32xf32, #tpu.memory_space<vmem>>, %arg6: memref<1x8x2xf32, #tpu.memory_space<vmem>>, %arg7: memref<8x16x16xf32, #tpu.memory_space<vmem>>) attributes {dimension_semantics = [#tpu.dimension_semantics<parallel>], iteration_bounds = array<i64: 2>, scalar_prefetch = 0 : i64, scratch_operands = 1 : i64, tpu.core_type = #tpu.core_type<tc>, window_params = [{transform_indices = @transform_0, window_bounds = array<i64: 1, 4, 256>}, {pipeline_mode = #tpu.pipeline_mode<synchronous>, transform_indices = @transform_1, window_bounds = array<i64: 8, 4>}, {pipeline_mode = #tpu.pipeline_mode<synchronous>, transform_indices = @transform_2, window_bounds = array<i64: 16, 32>}, {pipeline_mode = #tpu.pipeline_mode<synchronous>, transform_indices = @transform_3, window_bounds = array<i64: 16, 32>}, {transform_indices = @transform_4, window_bounds = array<i64: 1, 8, 32, 32>}, {transform_indices = @transform_5, window_bounds = array<i64: 1, 8, 2>}]} {
    %c0 = arith.constant 0 : index
    %c0_0 = arith.constant 0 : index
    %0 = vector.load %arg2[%c0, %c0_0] : memref<8x4xf32, #tpu.memory_space<vmem>>, vector<8x4xf32>
    %c0_1 = arith.constant 0 : index
    %c0_2 = arith.constant 0 : index
    %c0_3 = arith.constant 0 : index
    %1 = vector.load %arg1[%c0_1, %c0_2, %c0_3] : memref<1x4x256xf32, #tpu.memory_space<vmem>>, vector<1x4x256xf32>
    %2 = vector.shape_cast %1 : vector<1x4x256xf32> to vector<4x256xf32>
    %cst = arith.constant dense<0.000000e+00> : vector<8x256xf32>
    %3 = tpu.matmul %0, %2, %cst {dimension_numbers = #tpu.dot_dimension_numbers<[1], [0], [0], [1], [0, 0, 1, 1], [], []>} : vector<8x4xf32>, vector<4x256xf32>, vector<8x256xf32> -> vector<8x256xf32>
    %4 = vector.extract_strided_slice %3 {offsets = [0, 0], sizes = [8, 16], strides = [1, 1]} : vector<8x256xf32> to vector<8x16xf32>
    %c0_4 = arith.constant 0 : index
    %c0_5 = arith.constant 0 : index
    %c0_6 = arith.constant 0 : index
    %5 = vector.load %arg7[%c0_4, %c0_5, %c0_6] : memref<8x16x16xf32, #tpu.memory_space<vmem>>, vector<8x1x16xf32>
    %6 = vector.shape_cast %5 : vector<8x1x16xf32> to vector<8x16xf32>
    %7 = vector.shape_cast %4 : vector<8x16xf32> to vector<8x1x16xf32>
    tpu.vector_store %arg7[%c0_4, %c0_5, %c0_6], %7 {strides = array<i32>} : memref<8x16x16xf32, #tpu.memory_space<vmem>>, vector<8x1x16xf32>,
    %8 = vector.extract_strided_slice %3 {offsets = [0, 16], sizes = [8, 16], strides = [1, 1]} : vector<8x256xf32> to vector<8x16xf32>
    %c0_7 = arith.constant 0 : index
    %c1 = arith.constant 1 : index
    %c0_8 = arith.constant 0 : index
    %9 = vector.load %arg7[%c0_7, %c1, %c0_8] : memref<8x16x16xf32, #tpu.memory_space<vmem>>, vector<8x1x16xf32>
    %10 = vector.shape_cast %9 : vector<8x1x16xf32> to vector<8x16xf32>
    %11 = vector.shape_cast %8 : vector<8x16xf32> to vector<8x1x16xf32>
    tpu.vector_store %arg7[%c0_7, %c1, %c0_8], %11 {strides = array<i32>} : memref<8x16x16xf32, #tpu.memory_space<vmem>>, vector<8x1x16xf32>,
    %12 = vector.extract_strided_slice %3 {offsets = [0, 32], sizes = [8, 16], strides = [1, 1]} : vector<8x256xf32> to vector<8x16xf32>
    %c0_9 = arith.constant 0 : index
    %c2 = arith.constant 2 : index
    %c0_10 = arith.constant 0 : index
    %13 = vector.load %arg7[%c0_9, %c2, %c0_10] : memref<8x16x16xf32, #tpu.memory_space<vmem>>, vector<8x1x16xf32>
    %14 = vector.shape_cast %13 : vector<8x1x16xf32> to vector<8x16xf32>
    %15 = vector.shape_cast %12 : vector<8x16xf32> to vector<8x1x16xf32>
    tpu.vector_store %arg7[%c0_9, %c2, %c0_10], %15 {strides = array<i32>} : memref<8x16x16xf32, #tpu.memory_space<vmem>>, vector<8x1x16xf32>,
    %16 = vector.extract_strided_slice %3 {offsets = [0, 48], sizes = [8, 16], strides = [1, 1]} : vector<8x256xf32> to vector<8x16xf32>
    %c0_11 = arith.constant 0 : index
    %c3 = arith.constant 3 : index
    %c0_12 = arith.constant 0 : index
    %17 = vector.load %arg7[%c0_11, %c3, %c0_12] : memref<8x16x16xf32, #tpu.memory_space<vmem>>, vector<8x1x16xf32>
    %18 = vector.shape_cast %17 : vector<8x1x16xf32> to vector<8x16xf32>
    %19 = vector.shape_cast %16 : vector<8x16xf32> to vector<8x1x16xf32>
    tpu.vector_store %arg7[%c0_11, %c3, %c0_12], %19 {strides = array<i32>} : memref<8x16x16xf32, #tpu.memory_space<vmem>>, vector<8x1x16xf32>,
    %20 = vector.extract_strided_slice %3 {offsets = [0, 64], sizes = [8, 16], strides = [1, 1]} : vector<8x256xf32> to vector<8x16xf32>
    %c0_13 = arith.constant 0 : index
    %c4 = arith.constant 4 : index
    %c0_14 = arith.constant 0 : index
    %21 = vector.load %arg7[%c0_13, %c4, %c0_14] : memref<8x16x16xf32, #tpu.memory_space<vmem>>, vector<8x1x16xf32>
    %22 = vector.shape_cast %21 : vector<8x1x16xf32> to vector<8x16xf32>
    %23 = vector.shape_cast %20 : vector<8x16xf32> to vector<8x1x16xf32>
    tpu.vector_store %arg7[%c0_13, %c4, %c0_14], %23 {strides = array<i32>} : memref<8x16x16xf32, #tpu.memory_space<vmem>>, vector<8x1x16xf32>,
    %24 = vector.extract_strided_slice %3 {offsets = [0, 80], sizes = [8, 16], strides = [1, 1]} : vector<8x256xf32> to vector<8x16xf32>
    %c0_15 = arith.constant 0 : index
    %c5 = arith.constant 5 : index
    %c0_16 = arith.constant 0 : index
    %25 = vector.load %arg7[%c0_15, %c5, %c0_16] : memref<8x16x16xf32, #tpu.memory_space<vmem>>, vector<8x1x16xf32>
    %26 = vector.shape_cast %25 : vector<8x1x16xf32> to vector<8x16xf32>
    %27 = vector.shape_cast %24 : vector<8x16xf32> to vector<8x1x16xf32>
    tpu.vector_store %arg7[%c0_15, %c5, %c0_16], %27 {strides = array<i32>} : memref<8x16x16xf32, #tpu.memory_space<vmem>>, vector<8x1x16xf32>,
    %28 = vector.extract_strided_slice %3 {offsets = [0, 96], sizes = [8, 16], strides = [1, 1]} : vector<8x256xf32> to vector<8x16xf32>
    %c0_17 = arith.constant 0 : index
    %c6 = arith.constant 6 : index
    %c0_18 = arith.constant 0 : index
    %29 = vector.load %arg7[%c0_17, %c6, %c0_18] : memref<8x16x16xf32, #tpu.memory_space<vmem>>, vector<8x1x16xf32>
    %30 = vector.shape_cast %29 : vector<8x1x16xf32> to vector<8x16xf32>
    %31 = vector.shape_cast %28 : vector<8x16xf32> to vector<8x1x16xf32>
    tpu.vector_store %arg7[%c0_17, %c6, %c0_18], %31 {strides = array<i32>} : memref<8x16x16xf32, #tpu.memory_space<vmem>>, vector<8x1x16xf32>,
    %32 = vector.extract_strided_slice %3 {offsets = [0, 112], sizes = [8, 16], strides = [1, 1]} : vector<8x256xf32> to vector<8x16xf32>
    %c0_19 = arith.constant 0 : index
    %c7 = arith.constant 7 : index
    %c0_20 = arith.constant 0 : index
    %33 = vector.load %arg7[%c0_19, %c7, %c0_20] : memref<8x16x16xf32, #tpu.memory_space<vmem>>, vector<8x1x16xf32>
    %34 = vector.shape_cast %33 : vector<8x1x16xf32> to vector<8x16xf32>
    %35 = vector.shape_cast %32 : vector<8x16xf32> to vector<8x1x16xf32>
    tpu.vector_store %arg7[%c0_19, %c7, %c0_20], %35 {strides = array<i32>} : memref<8x16x16xf32, #tpu.memory_space<vmem>>, vector<8x1x16xf32>,
    %36 = vector.extract_strided_slice %3 {offsets = [0, 128], sizes = [8, 16], strides = [1, 1]} : vector<8x256xf32> to vector<8x16xf32>
    %c0_21 = arith.constant 0 : index
    %c8 = arith.constant 8 : index
    %c0_22 = arith.constant 0 : index
    %37 = vector.load %arg7[%c0_21, %c8, %c0_22] : memref<8x16x16xf32, #tpu.memory_space<vmem>>, vector<8x1x16xf32>
    %38 = vector.shape_cast %37 : vector<8x1x16xf32> to vector<8x16xf32>
    %39 = vector.shape_cast %36 : vector<8x16xf32> to vector<8x1x16xf32>
    tpu.vector_store %arg7[%c0_21, %c8, %c0_22], %39 {strides = array<i32>} : memref<8x16x16xf32, #tpu.memory_space<vmem>>, vector<8x1x16xf32>,
    %40 = vector.extract_strided_slice %3 {offsets = [0, 144], sizes = [8, 16], strides = [1, 1]} : vector<8x256xf32> to vector<8x16xf32>
    %c0_23 = arith.constant 0 : index
    %c9 = arith.constant 9 : index
    %c0_24 = arith.constant 0 : index
    %41 = vector.load %arg7[%c0_23, %c9, %c0_24] : memref<8x16x16xf32, #tpu.memory_space<vmem>>, vector<8x1x16xf32>
    %42 = vector.shape_cast %41 : vector<8x1x16xf32> to vector<8x16xf32>
    %43 = vector.shape_cast %40 : vector<8x16xf32> to vector<8x1x16xf32>
    tpu.vector_store %arg7[%c0_23, %c9, %c0_24], %43 {strides = array<i32>} : memref<8x16x16xf32, #tpu.memory_space<vmem>>, vector<8x1x16xf32>,
    %44 = vector.extract_strided_slice %3 {offsets = [0, 160], sizes = [8, 16], strides = [1, 1]} : vector<8x256xf32> to vector<8x16xf32>
    %c0_25 = arith.constant 0 : index
    %c10 = arith.constant 10 : index
    %c0_26 = arith.constant 0 : index
    %45 = vector.load %arg7[%c0_25, %c10, %c0_26] : memref<8x16x16xf32, #tpu.memory_space<vmem>>, vector<8x1x16xf32>
    %46 = vector.shape_cast %45 : vector<8x1x16xf32> to vector<8x16xf32>
    %47 = vector.shape_cast %44 : vector<8x16xf32> to vector<8x1x16xf32>
    tpu.vector_store %arg7[%c0_25, %c10, %c0_26], %47 {strides = array<i32>} : memref<8x16x16xf32, #tpu.memory_space<vmem>>, vector<8x1x16xf32>,
    %48 = vector.extract_strided_slice %3 {offsets = [0, 176], sizes = [8, 16], strides = [1, 1]} : vector<8x256xf32> to vector<8x16xf32>
    %c0_27 = arith.constant 0 : index
    %c11 = arith.constant 11 : index
    %c0_28 = arith.constant 0 : index
    %49 = vector.load %arg7[%c0_27, %c11, %c0_28] : memref<8x16x16xf32, #tpu.memory_space<vmem>>, vector<8x1x16xf32>
    %50 = vector.shape_cast %49 : vector<8x1x16xf32> to vector<8x16xf32>
    %51 = vector.shape_cast %48 : vector<8x16xf32> to vector<8x1x16xf32>
    tpu.vector_store %arg7[%c0_27, %c11, %c0_28], %51 {strides = array<i32>} : memref<8x16x16xf32, #tpu.memory_space<vmem>>, vector<8x1x16xf32>,
    %52 = vector.extract_strided_slice %3 {offsets = [0, 192], sizes = [8, 16], strides = [1, 1]} : vector<8x256xf32> to vector<8x16xf32>
    %c0_29 = arith.constant 0 : index
    %c12 = arith.constant 12 : index
    %c0_30 = arith.constant 0 : index
    %53 = vector.load %arg7[%c0_29, %c12, %c0_30] : memref<8x16x16xf32, #tpu.memory_space<vmem>>, vector<8x1x16xf32>
    %54 = vector.shape_cast %53 : vector<8x1x16xf32> to vector<8x16xf32>
    %55 = vector.shape_cast %52 : vector<8x16xf32> to vector<8x1x16xf32>
    tpu.vector_store %arg7[%c0_29, %c12, %c0_30], %55 {strides = array<i32>} : memref<8x16x16xf32, #tpu.memory_space<vmem>>, vector<8x1x16xf32>,
    %56 = vector.extract_strided_slice %3 {offsets = [0, 208], sizes = [8, 16], strides = [1, 1]} : vector<8x256xf32> to vector<8x16xf32>
    %c0_31 = arith.constant 0 : index
    %c13 = arith.constant 13 : index
    %c0_32 = arith.constant 0 : index
    %57 = vector.load %arg7[%c0_31, %c13, %c0_32] : memref<8x16x16xf32, #tpu.memory_space<vmem>>, vector<8x1x16xf32>
    %58 = vector.shape_cast %57 : vector<8x1x16xf32> to vector<8x16xf32>
    %59 = vector.shape_cast %56 : vector<8x16xf32> to vector<8x1x16xf32>
    tpu.vector_store %arg7[%c0_31, %c13, %c0_32], %59 {strides = array<i32>} : memref<8x16x16xf32, #tpu.memory_space<vmem>>, vector<8x1x16xf32>,
    %60 = vector.extract_strided_slice %3 {offsets = [0, 224], sizes = [8, 16], strides = [1, 1]} : vector<8x256xf32> to vector<8x16xf32>
    %c0_33 = arith.constant 0 : index
    %c14 = arith.constant 14 : index
    %c0_34 = arith.constant 0 : index
    %61 = vector.load %arg7[%c0_33, %c14, %c0_34] : memref<8x16x16xf32, #tpu.memory_space<vmem>>, vector<8x1x16xf32>
    %62 = vector.shape_cast %61 : vector<8x1x16xf32> to vector<8x16xf32>
    %63 = vector.shape_cast %60 : vector<8x16xf32> to vector<8x1x16xf32>
    tpu.vector_store %arg7[%c0_33, %c14, %c0_34], %63 {strides = array<i32>} : memref<8x16x16xf32, #tpu.memory_space<vmem>>, vector<8x1x16xf32>,
    %64 = vector.extract_strided_slice %3 {offsets = [0, 240], sizes = [8, 16], strides = [1, 1]} : vector<8x256xf32> to vector<8x16xf32>
    %c0_35 = arith.constant 0 : index
    %c15 = arith.constant 15 : index
    %c0_36 = arith.constant 0 : index
    %65 = vector.load %arg7[%c0_35, %c15, %c0_36] : memref<8x16x16xf32, #tpu.memory_space<vmem>>, vector<8x1x16xf32>
    %66 = vector.shape_cast %65 : vector<8x1x16xf32> to vector<8x16xf32>
    %67 = vector.shape_cast %64 : vector<8x16xf32> to vector<8x1x16xf32>
    tpu.vector_store %arg7[%c0_35, %c15, %c0_36], %67 {strides = array<i32>} : memref<8x16x16xf32, #tpu.memory_space<vmem>>, vector<8x1x16xf32>,
    %c0_37 = arith.constant 0 : index
    %c0_38 = arith.constant 0 : index
    %c0_39 = arith.constant 0 : index
    %68 = vector.load %arg7[%c0_37, %c0_38, %c0_39] : memref<8x16x16xf32, #tpu.memory_space<vmem>>, vector<8x16x16xf32>
    %69 = tpu.transpose %68, [0, 2, 1] : vector<8x16x16xf32> -> vector<8x16x16xf32>
    %70 = vector.shape_cast %69 : vector<8x16x16xf32> to vector<128x16xf32>
    %c0_40 = arith.constant 0 : index
    %c0_41 = arith.constant 0 : index
    %71 = vector.load %arg3[%c0_40, %c0_41] : memref<16x32xf32, #tpu.memory_space<vmem>>, vector<16x32xf32>
    %cst_42 = arith.constant dense<0.000000e+00> : vector<128x32xf32>
    %72 = tpu.matmul %70, %71, %cst_42 {dimension_numbers = #tpu.dot_dimension_numbers<[1], [0], [0], [1], [0, 0, 1, 1], [], []>} : vector<128x16xf32>, vector<16x32xf32>, vector<128x32xf32> -> vector<128x32xf32>
    %73 = vector.shape_cast %72 : vector<128x32xf32> to vector<8x16x32xf32>
    %74 = tpu.transpose %73, [0, 2, 1] : vector<8x16x32xf32> -> vector<8x32x16xf32>
    %75 = vector.shape_cast %74 : vector<8x32x16xf32> to vector<256x16xf32>
    %c0_43 = arith.constant 0 : index
    %c0_44 = arith.constant 0 : index
    %76 = vector.load %arg4[%c0_43, %c0_44] : memref<16x32xf32, #tpu.memory_space<vmem>>, vector<16x32xf32>
    %cst_45 = arith.constant dense<0.000000e+00> : vector<256x32xf32>
    %77 = tpu.matmul %75, %76, %cst_45 {dimension_numbers = #tpu.dot_dimension_numbers<[1], [0], [0], [1], [0, 0, 1, 1], [], []>} : vector<256x16xf32>, vector<16x32xf32>, vector<256x32xf32> -> vector<256x32xf32>
    %78 = vector.shape_cast %77 : vector<256x32xf32> to vector<8x32x32xf32>
    %c0_46 = arith.constant 0 : index
    %c0_47 = arith.constant 0 : index
    %c0_48 = arith.constant 0 : index
    %c0_49 = arith.constant 0 : index
    %79 = vector.load %arg5[%c0_46, %c0_47, %c0_48, %c0_49] : memref<1x8x32x32xf32, #tpu.memory_space<vmem>>, vector<1x8x32x32xf32>
    %80 = vector.shape_cast %79 : vector<1x8x32x32xf32> to vector<8x32x32xf32>
    %81 = vector.shape_cast %78 : vector<8x32x32xf32> to vector<1x8x32x32xf32>
    tpu.vector_store %arg5[%c0_46, %c0_47, %c0_48, %c0_49], %81 {strides = array<i32>} : memref<1x8x32x32xf32, #tpu.memory_space<vmem>>, vector<1x8x32x32xf32>,
    %cst_50 = arith.constant dense<0.000000e+00> : vector<8x32xf32>
    %82 = vector.multi_reduction <add>, %78, %cst_50 [2] : vector<8x32x32xf32> to vector<8x32xf32>
    %cst_51 = arith.constant dense<0.000000e+00> : vector<8xf32>
    %83 = vector.multi_reduction <add>, %82, %cst_51 [1] : vector<8x32xf32> to vector<8xf32>
    %84 = vector.shape_cast %83 : vector<8xf32> to vector<8x1xf32>
    %85 = arith.mulf %78, %78 : vector<8x32x32xf32>
    %cst_52 = arith.constant dense<0.000000e+00> : vector<8x32xf32>
    %86 = vector.multi_reduction <add>, %85, %cst_52 [2] : vector<8x32x32xf32> to vector<8x32xf32>
    %cst_53 = arith.constant dense<0.000000e+00> : vector<8xf32>
    %87 = vector.multi_reduction <add>, %86, %cst_53 [1] : vector<8x32xf32> to vector<8xf32>
    %88 = vector.shape_cast %87 : vector<8xf32> to vector<8x1xf32>
    %89 = tpu.concatenate %84, %88 in 1 : vector<8x1xf32>, vector<8x1xf32> -> vector<8x2xf32>
    %c0_54 = arith.constant 0 : index
    %c0_55 = arith.constant 0 : index
    %c0_56 = arith.constant 0 : index
    %90 = vector.load %arg6[%c0_54, %c0_55, %c0_56] : memref<1x8x2xf32, #tpu.memory_space<vmem>>, vector<1x8x2xf32>
    %91 = vector.shape_cast %90 : vector<1x8x2xf32> to vector<8x2xf32>
    %92 = vector.shape_cast %89 : vector<8x2xf32> to vector<1x8x2xf32>
    tpu.vector_store %arg6[%c0_54, %c0_55, %c0_56], %92 {strides = array<i32>} : memref<1x8x2xf32, #tpu.memory_space<vmem>>, vector<1x8x2xf32>,
    return
  }
  func.func @transform_0(%arg0: i32) -> (i32, i32, i32) {
    %c0_i32 = arith.constant 0 : i32
    %c0_i32_0 = arith.constant 0 : i32
    %c0_i32_1 = arith.constant 0 : i32
    return %arg0, %c0_i32, %c0_i32_0 : i32, i32, i32
  }
  func.func @transform_1(%arg0: i32) -> (i32, i32) {
    %c0_i32 = arith.constant 0 : i32
    %c0_i32_0 = arith.constant 0 : i32
    %c0_i32_1 = arith.constant 0 : i32
    return %c0_i32, %c0_i32_0 : i32, i32
  }
  func.func @transform_2(%arg0: i32) -> (i32, i32) {
    %c0_i32 = arith.constant 0 : i32
    %c0_i32_0 = arith.constant 0 : i32
    %c0_i32_1 = arith.constant 0 : i32
    return %c0_i32, %c0_i32_0 : i32, i32
  }
  func.func @transform_3(%arg0: i32) -> (i32, i32) {
    %c0_i32 = arith.constant 0 : i32
    %c0_i32_0 = arith.constant 0 : i32
    %c0_i32_1 = arith.constant 0 : i32
    return %c0_i32, %c0_i32_0 : i32, i32
  }
  func.func @transform_4(%arg0: i32) -> (i32, i32, i32, i32) {
    %c0_i32 = arith.constant 0 : i32
    %c0_i32_0 = arith.constant 0 : i32
    %c0_i32_1 = arith.constant 0 : i32
    %c0_i32_2 = arith.constant 0 : i32
    return %arg0, %c0_i32, %c0_i32_0, %c0_i32_1 : i32, i32, i32, i32
  }
  func.func @transform_5(%arg0: i32) -> (i32, i32, i32) {
    %c0_i32 = arith.constant 0 : i32
    %c0_i32_0 = arith.constant 0 : i32
    %c0_i32_1 = arith.constant 0 : i32
    return %arg0, %c0_i32, %c0_i32_0 : i32, i32, i32
  }
}

</mosaic_0001>

<bundles_post_ra>
// kernel: tpu_custom_call.1
= control target key start
LH: loop header
LB: loop body
LE: loop exit
PB: predicated region body
PF: predicated region fallthrough
CT: control target
= control target key end

     0   :  { %11 = vsyncpa [#allocation4], 0  ;;  %s4262_s0 = inlined_call_operand.hbm [shape: f32[2,4,256], index: 0, kind: input, shape index: {}]   ;;  %s4263_s1 = inlined_call_operand.vmem [shape: f32[8,4], index: 1, kind: input, shape index: {}]   ;;  %s4264_s2 = inlined_call_operand.vmem [shape: f32[16,32], index: 2, kind: input, shape index: {}]   ;;  %s4265_s3 = inlined_call_operand.hbm [shape: f32[16,32], index: 3, kind: input, shape index: {}]   ;;  %s4266_s4 = inlined_call_operand.hbm [shape: f32[2,8,32,32], index: 4, kind: output, shape index: {0}]   ;;  %s4267_s5 = inlined_call_operand.vmem [shape: f32[2,8,2], index: 5, kind: output, shape index: {1}]  }
   0x1   :  { %13 = vsyncpa [#allocation4 + $0x1], 0 }
   0x2   :  { %14 = vsyncpa [#allocation7], 0 }
   0x3   :  { %15 = vsyncpa [#allocation5], 0 }
   0x4   :  { %17 = vsyncpa [#allocation5 + $0x1], 0  ;;  %s3296_s18 = smov 0   ;;  %s3298_s19 = smov 0  }
   0x5   :  { %s3300_s20 = smov 0   ;;  %s3302_s21 = smov 0  }
   0x6 LB: > { %s3317_s22 = sadd.s32 4294967295, %s3248_s21   ;;  %s2837_s23 = sadd.s32 4294967294, %s3248_s21   ;;  %s3248_s21 = sphi %s3302_s21, %s4287_s21   ;;  %s3244_s20 = sphi %s3300_s20, %s4286_s20   ;;  %s3240_s19 = sphi %s3298_s19, %s4285_s19   ;;  %s3236_s18 = sphi %s3296_s18, %s4284_s18  }
   0x7   : > { %p43_p0 = scmp.ne.s32.totalorder %s3240_s19, %s3236_s18  ;;  %p4268_p1 = scmp.eq.s32.totalorder %s3317_s22, 0 }
   0x8   : > { %p136_p3 = scmp.eq.s32.totalorder %s2837_s23, 1  ;;  %p2838_p5 = scmp.ge.s32.totalorder %s3248_s21, 1 }
   0x9   : > { %p3326_p4 = por %p4268_p1, %p43_p0  ;;  %p169_p7 = scmp.lt.s32.totalorder %s3248_s21, 3 }
   0xa   : > { %p3331_p6 = por %p136_p3, %p43_p0  ;;  %s3250_s27 = smov [#allocation6]  }
   0xb   : > { %s4271_s24 = scalar_select %p3326_p4, 1, 0 }
   0xc   : > { %s4272_s25 = scalar_select %p3331_p6, 1, 0 }
   0xd   : > { %p3336_p8 = pnand %p2838_p5, %p169_p7  ;;  %s187_s28 = sshll.u32 %s3250_s27, 4  ;;  %s3340_s28 = int_to_ptr.vmem [resolvable:$true] %s187_s28 }
   0xe   : > { %s3352_s30 = sadd.s32 1, %s3248_s21   ;;  %s30_s6 = sadd.s32 1, %s3244_s20 }
   0xf   : > { %s4273_s26 = scalar_select %p3336_p8, 1, 0 }
  0x10   : > { %p3057_p9 = pneg %p3336_p8  ;;  %s27_s7 = ssub.s32 %s3248_s21, %s3352_s30 }
  0x11   : > { %s3120_s10 = scalar_lea.hbm %s4265_s3, 256 }
  0x12   : > { %p3347_p11 = pnand %p3057_p9, %p4268_p1  ;;  %p3121_p12 = scmp.ne.s32.totalorder %s4265_s3, %s3120_s10 }
  0x13   : > { %p3127_p5 = scmp.lt.u32.totalorder %s3120_s10, %s4265_s3 }
  0x14   : > { %p3122_p13 = pneg %p3347_p11 }
  0x16   : > { %p3123_p0 = pnand %p3122_p13, %p3121_p12 }
  0x18   : > { %p3124_p3 = pneg %p3123_p0 }
  0x1a   : > { %p3129_p7 = pnand %p3127_p5, %p3124_p3 }
  0x1c   : > { %3132 = shalt.err (!%p3129_p7)
}
  0x1d   : > { %s3133_s15 = scalar_lea.vmem %s3340_s28, 256  ;;  %p3141_p2 = scmp.lt.s32.totalorder %s3340_s28, %s3340_s28 }
  0x1e   : > { %p3134_p9 = scmp.ne.s32.totalorder %s3340_s28, %s3133_s15  ;;  %p3142_p6 = scmp.lt.s32.totalorder %s3133_s15, %s3133_s15 }
  0x20   : > { %p3136_p10 = pnand %p3134_p9, %p3122_p13  ;;  %p3143_p4 = por %p3142_p6, %p3141_p2 }
  0x22   : > { %p3137_p1 = pneg %p3136_p10 }
  0x24   : > { %p3144_p8 = pnand %p3143_p4, %p3137_p1 }
  0x26   : > { %3147 = shalt.err (!%p3144_p8)
}
  0x27   : > { %s3251_s16 = smov 128   ;;  %s3252_s17 = smov 8  }
  0x28   : > { %3060 = dma.hbm_to_vmem [thread:$0]  (!%p3347_p11), %s4265_s3, 256, %s3340_s28, [#allocation7], %s3251_s16, %s3251_s16, %s3252_s17  }
  0x29   : > { %p28_p2 = scmp.eq.s32.totalorder %s27_s7, 0  ;;  %p37_p1 = scmp.ne.s32.totalorder %s3244_s20, %s3240_s19 }
  0x2a   : > { %p38_p4 = scmp.eq.s32.totalorder %s3248_s21, 0  ;;  %p3070_p6 = scmp.lt.s32.totalorder %s3248_s21, 2 }
  0x2b   : > { %s3383_s8 = scalar_select %p28_p2, %s3244_s20, %s30_s6  }
  0x2c   : > { %p39_p8 = por %p38_p4, %p37_p1  ;;  %p4275_p10 = scmp.eq.s32.totalorder %s3317_s22, 1 }
  0x2d   : > { %s201_s10 = sand.u32 1, %s3244_s20   ;;  %s2905_s11 = sshll.u32 %s3248_s21, 7 }
  0x2e   : > { %p3387_p12 = por %p4275_p10, %p37_p1  ;;  %s2841_s12 = sshll.u32 %s201_s10, 3 }
  0x2f   : > { %s3396_s14 = scalar_lea.hbm %s4262_s0, %s2905_s11  ;;  %s205_s28 = scalar_lea.vmem [#allocation3], %s2841_s12 }
  0x30   : > { %s213_s6 = sshll.u32 %s205_s28, 4  ;;  %p3398_p11 = pnand %p3070_p6, %p39_p8  ;;  %s3402_s6 = int_to_ptr.vmem [resolvable:$true] %s213_s6 }
  0x31   : > { %s202_s15 = scalar_lea.sflag [#allocation4], %s201_s10  ;;  %s3148_s16 = scalar_lea.hbm %s3396_s14, 128 }
  0x32   : > { %p3149_p13 = scmp.ne.s32.totalorder %s3396_s14, %s3148_s16  ;;  %p3150_p0 = pneg %p3398_p11 }
  0x33   : > { %s3153_s27 = scalar_lea.hbm %s4262_s0, 256  ;;  %p3154_p7 = scmp.lt.u32.totalorder %s3396_s14, %s4262_s0 }
  0x34   : > { %p3151_p3 = pnand %p3150_p0, %p3149_p13  ;;  %p3155_p9 = scmp.lt.u32.totalorder %s3153_s27, %s3148_s16 }
  0x35   : > { %p3157_p1 = scmp.lt.u32.totalorder %s3148_s16, %s3396_s14 }
  0x36   : > { %p3152_p5 = pneg %p3151_p3  ;;  %p3156_p2 = por %p3155_p9, %p3154_p7 }
  0x38   : > { %p3158_p4 = por %p3157_p1, %p3156_p2 }
  0x3a   : > { %p3159_p6 = pnand %p3158_p4, %p3152_p5 }
  0x3c   : > { %3162 = shalt.err (!%p3159_p6)
}
  0x3d   : > { %s3163_s10 = scalar_lea.vmem %s3402_s6, 128  ;;  %s3253_s29 = smov [#allocation3]  }
  0x3e   : > { %p3164_p8 = scmp.ne.s32.totalorder %s3402_s6, %s3163_s10  ;;  %s3168_s13 = sshll.u32 %s3253_s29, 4  ;;  %s3169_s13 = int_to_ptr.vmem [resolvable:$false] %s3168_s13 }
  0x3f   : > { %s3170_s28 = scalar_lea.vmem %s3169_s13, 256  ;;  %p3171_p3 = scmp.lt.s32.totalorder %s3402_s6, %s3169_s13 }
  0x40   : > { %p3166_p10 = pnand %p3164_p8, %p3150_p0  ;;  %p3172_p7 = scmp.lt.s32.totalorder %s3170_s28, %s3163_s10 }
  0x42   : > { %p3167_p13 = pneg %p3166_p10  ;;  %p3173_p9 = por %p3172_p7, %p3171_p3 }
  0x44   : > { %p3174_p2 = pnand %p3173_p9, %p3167_p13 }
  0x46   : > { %3177 = shalt.err (!%p3174_p2)
}
  0x47   : > { %3064 = dma.hbm_to_vmem [thread:$0]  (!%p3398_p11), %s3396_s14, 128, %s3402_s6, %s202_s15  }
  0x48   : > { %p4278_p5 = scmp.ne.s32.totalorder %s4273_s26, 0 }
  0x49   : > { %s3432_s16 = sand.u32 (!%p4278_p5), 1, %s3240_s19   ;;  %p4279_p0 = scmp.ne.s32.totalorder (!%p4278_p5), %s4271_s24, 0 }
  0x4a   : > { %222 = sbr.rel (%p4278_p5) target bundleno = 1688 (0x698), region = 36  ;;  %s2845_s17 = sshll.u32 (!%p4278_p5), %s3432_s16, 3 }
  0x4b   : > { %s225_s23 = scalar_lea.sflag (!%p4278_p5), [#allocation4], %s3432_s16  ;;  %s228_s27 = scalar_lea.vmem (!%p4278_p5), [#allocation3], %s2845_s17 }
  0x51   : > { %3223 = dma.done.wait (%p4279_p0), %s225_s23, 128  }
  0x52   : > { %3225 = vsyncadd (%p4279_p0), %s225_s23, 4294967168  ;;  %p4280_p1 = scmp.eq.s32.totalorder %s3317_s22, 0 }
  0x54   : > { %3227 = dma.done.wait (%p4280_p1), [#allocation7], 256   ;;  %p4281_p11 = pmov %p4280_p1 }
  0x55   : > { %v3254_v0 = vmov 0.0   ;;  %v268_v1 = vld [vmem:[%s228_s27] sm:$0xff]  ;;  %vm275_vm0 = vcmask 1043456   ;;  %vm271_vm1 = vcmask 31744   ;;  %v3255_v4 = vmov 1966171168  }
  0x56   : > { %3229 = vsyncadd (%p4281_p11), [#allocation7], 4294967040  ;;  %344 = vmatprep.mubr.f32.mxu0 %v3254_v0  ;;  %v270_v2 = vcombine.high %v268_v1, %v268_v1  ;;  %v267_v3 = vld [vmem:[%s4263_s1] sm:$0xff]  ;;  %v354_v5 = vunpack.c.l.s4 %v3255_v4  ;;  %v356_v6 = vlaneseq  ;;  %vm409_vm2 = vcmask 122880   ;;  %s3256_s24 = smov 80   ;;  %s3257_s6 = smov 112  }
  0x57   : > { %s3258_s7 = smov 64   ;;  %s3259_s15 = smov 96   ;;  %vm1270_vm3 = vcmask 130048   ;;  %vm2043_vm4 = vcmask 261120   ;;  %vm2215_vm5 = vcmask 130112   ;;  %vm2222_vm6 = vcmask 195712  }
  0x58   : > { %2849 = vmatprep.subr.msk.mxu0 %vm275_vm0, %v270_v2  ;;  %v355_v7 = vunpack.c.0.s8 %v354_v5  ;;  %v3448_v8 = vshrl.u32 %v356_v6, 7  ;;  %s3260_s11 = smov 32   ;;  %s3261_s12 = smov 48   ;;  %vm2229_vm7 = vcmask 261312   ;;  %vm2364_vm8 = vcmask 1041409  }
  0x59   : > { %2850 = vmatpush1.msk.msra.mxu0 %vm275_vm0, %v268_v1  ;;  %s3262_s10 = smov 16   ;;  %s2847_s23 = sshll.u32 %s3432_s16, 8  ;;  %vm2366_vm9 = vcmask 1042434   ;;  %vm2368_vm10 = vcmask 1043459   ;;  %vm2370_vm11 = vcmask 1044484   ;;  %vm2372_vm12 = vcmask 1045509  }
  0x5a   : > { %2851 = vmatmul.mubr.msk.f32.vlgmr.msra.gmra.mrb[0].mxu0 %vm271_vm1, %v267_v3  ;;  %v358_v9 = vsub.s32 %v355_v7, %v3448_v8  ;;  %v3452_v14 = vsub.s32 0, %v3448_v8  ;;  %s3871_s27 = scalar_lea.vmem [#allocation8], %s2847_s23  ;;  %vm2374_vm13 = vcmask 1046534   ;;  %vm2376_vm14 = vcmask 1047559   ;;  %s2906_s26 = sshll.u32 %s3317_s22, 12 }
 0x12d   : > { %v346_v10 = vpop.f32.mrb[0].mxu0 }
 0x12e   : > { %v352_v11 = vcombine.high %v346_v10, %v346_v10  ;;  %v359_v12 = vrot.slane %v346_v10, %v358_v9  ;;  %v348_v13 = vpop.f32.mrb[1].mxu0 }
 0x12f   : > { %v675_v15 = vcombine.high %v348_v13, %v348_v13  ;;  %v682_v16 = vrot.slane %v348_v13, %v358_v9 }
 0x130   : > { %v366_v17 = vrot.slane %v352_v11, %v358_v9  ;;  %v367_v18 = vcombine.high %v359_v12, %v359_v12  ;;  %v375_v19 = vrot.slane %v359_v12, %v358_v9 }
 0x131   : > { %v689_v20 = vrot.slane %v675_v15, %v358_v9  ;;  %v690_v21 = vcombine.high %v682_v16, %v682_v16  ;;  %v698_v22 = vrot.slane %v682_v16, %v358_v9 }
 0x132   : > { %v368_v23 = vcombine.high %v366_v17, %v366_v17  ;;  %v3454_v24 = vrot.slane %v366_v17, %v358_v9  ;;  %v3456_v25 = vrot.slane %v367_v18, %v358_v9  ;;  %v3458_v26 = vcombine.high %v375_v19, %v375_v19  ;;  %410 = vst.msk [vmem:[#allocation2] sm:$0x1] %vm409_vm2, %v375_v19 }
 0x133   : > { %v421_v27 = vrot.slane %v375_v19, %v3452_v14  ;;  %v691_v28 = vcombine.high %v689_v20, %v689_v20  ;;  %v705_v29 = vrot.slane %v689_v20, %v358_v9  ;;  %v712_v30 = vrot.slane %v690_v21, %v358_v9  ;;  %732 = vst.msk [vmem:[#allocation2 + $0x8] sm:$0x1] %vm409_vm2, %v698_v22 }
 0x134   : > { %v396_v31 = vrot.slane %v368_v23, %v358_v9  ;;  %v398_v32 = vcombine.high %v3454_v24, %v3454_v24  ;;  %v399_v33 = vcombine.high %v3456_v25, %v3456_v25  ;;  %411 = vst.msk [vmem:[#allocation2 + $0x10] sm:$0x1] %vm409_vm2, %v3456_v25  ;;  %412 = vst.msk [vmem:[#allocation2 + $0x20] sm:$0x1] %vm409_vm2, %v3458_v26 }
 0x135   : > { %414 = vst.msk [vmem:[#allocation2 + $0x40] sm:$0x1] %vm409_vm2, %v3454_v24  ;;  %v719_v34 = vrot.slane %v691_v28, %v358_v9  ;;  %v720_v35 = vcombine.high %v698_v22, %v698_v22  ;;  %733 = vst.msk [vmem:[#allocation2 + $0x18] sm:$0x1] %vm409_vm2, %v712_v30  ;;  %514 = vrot.lane.b32.xlu1 %v421_v27, %s3256_s24  ;;  %450 = vrot.lane.b32.xlu0 %v421_v27, %s3257_s6 }
 0x136   : > { %736 = vst.msk [vmem:[#allocation2 + $0x48] sm:$0x1] %vm409_vm2, %v705_v29  ;;  %v400_v36 = vcombine.high %v396_v31, %v396_v31  ;;  %413 = vst.msk [vmem:[#allocation2 + $0x30] sm:$0x1] %vm409_vm2, %v399_v33  ;;  %v3480_v37 = vrot.slane %v399_v33, %v3452_v14  ;;  %v3483_v38 = vrot.slane %v396_v31, %v3452_v14 }
 0x137   : > { %415 = vst.msk [vmem:[#allocation2 + $0x50] sm:$0x1] %vm409_vm2, %v396_v31  ;;  %416 = vst.msk [vmem:[#allocation2 + $0x60] sm:$0x1] %vm409_vm2, %v398_v32  ;;  %v3486_v39 = vrot.slane %v398_v32, %v3452_v14  ;;  %v721_v40 = vcombine.high %v705_v29, %v705_v29  ;;  %v722_v41 = vcombine.high %v712_v30, %v712_v30 }
 0x138   : > { %v723_v42 = vcombine.high %v719_v34, %v719_v34  ;;  %734 = vst.msk [vmem:[#allocation2 + $0x28] sm:$0x1] %vm409_vm2, %v720_v35  ;;  %737 = vst.msk [vmem:[#allocation2 + $0x58] sm:$0x1] %vm409_vm2, %v719_v34  ;;  %v3493_v43 = vrot.slane %v400_v36, %v3452_v14  ;;  %v747_v44 = vrot.slane %v712_v30, %v3452_v14 }
 0x139   : > { %417 = vst.msk [vmem:[#allocation2 + $0x70] sm:$0x1] %vm409_vm2, %v400_v36  ;;  %v3497_v45 = vrot.slane %v720_v35, %v3452_v14  ;;  %v3500_v46 = vrot.slane %v705_v29, %v3452_v14  ;;  %735 = vst.msk [vmem:[#allocation2 + $0x38] sm:$0x1] %vm409_vm2, %v722_v41  ;;  %v3506_v47 = vrot.slane %v722_v41, %v3452_v14  ;;  %546 = vrot.lane.b32.xlu1 %v421_v27, %s3258_s7 }
 0x13a   : > { %738 = vst.msk [vmem:[#allocation2 + $0x68] sm:$0x1] %vm409_vm2, %v721_v40  ;;  %739 = vst.msk [vmem:[#allocation2 + $0x78] sm:$0x1] %vm409_vm2, %v723_v42  ;;  %v3509_v48 = vrot.slane %v719_v34, %v3452_v14  ;;  %v3512_v49 = vrot.slane %v721_v40, %v3452_v14  ;;  %v3515_v50 = vrot.slane %v723_v42, %v3452_v14  ;;  %482 = vrot.lane.b32.xlu0 %v421_v27, %s3259_s15 }
 0x13b   : > { %v743_v51 = vrot.slane %v698_v22, %v3452_v14  ;;  %v425_v52 = vrot.slane %v3456_v25, %v3452_v14  ;;  %v429_v53 = vrot.slane %v3458_v26, %v3452_v14  ;;  %v437_v54 = vrot.slane %v3454_v24, %v3452_v14 }
 0x13d   : > { %610 = vrot.lane.b32.xlu1 %v421_v27, %s3260_s11 }
 0x13e   : > { %578 = vrot.lane.b32.xlu0 %v421_v27, %s3261_s12 }
 0x141   : > { %772 = vrot.lane.b32.xlu1 %v743_v51, %s3257_s6 }
 0x142   : > { %642 = vrot.lane.b32.xlu0 %v421_v27, %s3262_s10 }
 0x145   : > { %836 = vrot.lane.b32.xlu1 %v743_v51, %s3256_s24 }
 0x146   : > { %804 = vrot.lane.b32.xlu0 %v743_v51, %s3259_s15 }
 0x149   : > { %900 = vrot.lane.b32.xlu1 %v743_v51, %s3261_s12 }
 0x14a   : > { %868 = vrot.lane.b32.xlu0 %v743_v51, %s3258_s7 }
 0x14d   : > { %964 = vrot.lane.b32.xlu1 %v743_v51, %s3262_s10 }
 0x14e   : > { %932 = vrot.lane.b32.xlu0 %v743_v51, %s3260_s11 }
 0x151   : > { %484 = vrot.lane.b32.xlu1 %v425_v52, %s3259_s15 }
 0x152   : > { %452 = vrot.lane.b32.xlu0 %v425_v52, %s3257_s6 }
 0x155   : > { %548 = vrot.lane.b32.xlu1 %v425_v52, %s3258_s7 }
 0x156   : > { %516 = vrot.lane.b32.xlu0 %v425_v52, %s3256_s24 }
 0x159   : > { %612 = vrot.lane.b32.xlu1 %v425_v52, %s3260_s11 }
 0x15a   : > { %580 = vrot.lane.b32.xlu0 %v425_v52, %s3261_s12 }
 0x15d   : > { %486 = vrot.lane.b32.xlu1 %v429_v53, %s3259_s15 }
 0x15e   : > { %644 = vrot.lane.b32.xlu0 %v425_v52, %s3262_s10 }
 0x161   : > { %550 = vrot.lane.b32.xlu1 %v429_v53, %s3258_s7 }
 0x162   : > { %454 = vrot.lane.b32.xlu0 %v429_v53, %s3257_s6 }
 0x165   : > { %614 = vrot.lane.b32.xlu1 %v429_v53, %s3260_s11 }
 0x166   : > { %518 = vrot.lane.b32.xlu0 %v429_v53, %s3256_s24 }
 0x169   : > { %490 = vrot.lane.b32.xlu1 %v437_v54, %s3259_s15 }
 0x16a   : > { %582 = vrot.lane.b32.xlu0 %v429_v53, %s3261_s12 }
 0x16d   : > { %554 = vrot.lane.b32.xlu1 %v437_v54, %s3258_s7 }
 0x16e   : > { %646 = vrot.lane.b32.xlu0 %v429_v53, %s3262_s10 }
 0x171   : > { %618 = vrot.lane.b32.xlu1 %v437_v54, %s3260_s11 }
 0x172   : > { %458 = vrot.lane.b32.xlu0 %v437_v54, %s3257_s6 }
 0x175   : > { %774 = vrot.lane.b32.xlu1 %v747_v44, %s3257_s6 }
 0x176   : > { %522 = vrot.lane.b32.xlu0 %v437_v54, %s3256_s24 }
 0x179   : > { %838 = vrot.lane.b32.xlu1 %v747_v44, %s3256_s24 }
 0x17a   : > { %586 = vrot.lane.b32.xlu0 %v437_v54, %s3261_s12 }
 0x17d   : > { %902 = vrot.lane.b32.xlu1 %v747_v44, %s3261_s12 }
 0x17e   : > { %650 = vrot.lane.b32.xlu0 %v437_v54, %s3262_s10 }
 0x181   : > { %966 = vrot.lane.b32.xlu1 %v747_v44, %s3262_s10 }
 0x182   : > { %806 = vrot.lane.b32.xlu0 %v747_v44, %s3259_s15 }
 0x185   : > { %776 = vrot.lane.b32.xlu1 %v3497_v45, %s3257_s6 }
 0x186   : > { %870 = vrot.lane.b32.xlu0 %v747_v44, %s3258_s7 }
 0x189   : > { %840 = vrot.lane.b32.xlu1 %v3497_v45, %s3256_s24 }
 0x18a   : > { %934 = vrot.lane.b32.xlu0 %v747_v44, %s3260_s11 }
 0x18d   : > { %904 = vrot.lane.b32.xlu1 %v3497_v45, %s3261_s12 }
 0x18e   : > { %808 = vrot.lane.b32.xlu0 %v3497_v45, %s3259_s15 }
 0x191   : > { %968 = vrot.lane.b32.xlu1 %v3497_v45, %s3262_s10 }
 0x192   : > { %872 = vrot.lane.b32.xlu0 %v3497_v45, %s3258_s7 }
 0x195   : > { %780 = vrot.lane.b32.xlu1 %v3500_v46, %s3257_s6 }
 0x196   : > { %936 = vrot.lane.b32.xlu0 %v3497_v45, %s3260_s11 }
 0x199   : > { %844 = vrot.lane.b32.xlu1 %v3500_v46, %s3256_s24 }
 0x19a   : > { %812 = vrot.lane.b32.xlu0 %v3500_v46, %s3259_s15 }
 0x19d   : > { %908 = vrot.lane.b32.xlu1 %v3500_v46, %s3261_s12 }
 0x19e   : > { %876 = vrot.lane.b32.xlu0 %v3500_v46, %s3258_s7 }
 0x1a1   : > { %972 = vrot.lane.b32.xlu1 %v3500_v46, %s3262_s10 }
 0x1a2   : > { %940 = vrot.lane.b32.xlu0 %v3500_v46, %s3260_s11 }
 0x1a5   : > { %488 = vrot.lane.b32.xlu1 %v3480_v37, %s3259_s15 }
 0x1a6   : > { %456 = vrot.lane.b32.xlu0 %v3480_v37, %s3257_s6 }
 0x1a7   : > { %v515_v55 = vpop.permute.xlu1 %514  ;;  %v451_v56 = vpop.permute.xlu0 %450 }
 0x1a8   : > { %538 = vst.msk [vmem:[#allocation2 + $0x3] sm:$0x1] %vm409_vm2, %v515_v55  ;;  %474 = vst.msk [vmem:[#allocation2 + $0x1] sm:$0x1] %vm409_vm2, %v451_v56 }
 0x1a9   : > { %552 = vrot.lane.b32.xlu1 %v3480_v37, %s3258_s7 }
 0x1aa   : > { %520 = vrot.lane.b32.xlu0 %v3480_v37, %s3256_s24 }
 0x1ab   : > { %v547_v57 = vpop.permute.xlu1 %546 }
 0x1ac   : > { %570 = vst.msk [vmem:[#allocation2 + $0x4] sm:$0x1] %vm409_vm2, %v547_v57  ;;  %v483_v58 = vpop.permute.xlu0 %482 }
 0x1ad   : > { %506 = vst.msk [vmem:[#allocation2 + $0x2] sm:$0x1] %vm409_vm2, %v483_v58  ;;  %616 = vrot.lane.b32.xlu1 %v3480_v37, %s3260_s11 }
 0x1ae   : > { %584 = vrot.lane.b32.xlu0 %v3480_v37, %s3261_s12 }
 0x1af   : > { %v611_v59 = vpop.permute.xlu1 %610 }
 0x1b0   : > { %634 = vst.msk [vmem:[#allocation2 + $0x6] sm:$0x1] %vm409_vm2, %v611_v59  ;;  %v579_v60 = vpop.permute.xlu0 %578 }
 0x1b1   : > { %602 = vst.msk [vmem:[#allocation2 + $0x5] sm:$0x1] %vm409_vm2, %v579_v60  ;;  %492 = vrot.lane.b32.xlu1 %v3483_v38, %s3259_s15 }
 0x1b2   : > { %648 = vrot.lane.b32.xlu0 %v3480_v37, %s3262_s10 }
 0x1b3   : > { %v773_v61 = vpop.permute.xlu1 %772 }
 0x1b4   : > { %v643_v62 = vpop.permute.xlu0 %642  ;;  %796 = vst.msk [vmem:[#allocation2 + $0x9] sm:$0x1] %vm409_vm2, %v773_v61 }
 0x1b5   : > { %666 = vst.msk [vmem:[#allocation2 + $0x7] sm:$0x1] %vm409_vm2, %v643_v62  ;;  %556 = vrot.lane.b32.xlu1 %v3483_v38, %s3258_s7 }
 0x1b6   : > { %460 = vrot.lane.b32.xlu0 %v3483_v38, %s3257_s6 }
 0x1b7   : > { %v837_v63 = vpop.permute.xlu1 %836 }
 0x1b8   : > { %v805_v0 = vpop.permute.xlu0 %804  ;;  %860 = vst.msk [vmem:[#allocation2 + $0xb] sm:$0x1] %vm409_vm2, %v837_v63 }
 0x1b9   : > { %828 = vst.msk [vmem:[#allocation2 + $0xa] sm:$0x1] %vm409_vm2, %v805_v0  ;;  %620 = vrot.lane.b32.xlu1 %v3483_v38, %s3260_s11  ;;  %v1268_v0 = vld [vmem:[%s4264_s2] sm:$0xff] }
 0x1ba   : > { %524 = vrot.lane.b32.xlu0 %v3483_v38, %s3256_s24 }
 0x1bb   : > { %v901_v1 = vpop.permute.xlu1 %900 }
 0x1bc   : > { %v869_v2 = vpop.permute.xlu0 %868  ;;  %924 = vst.msk [vmem:[#allocation2 + $0xd] sm:$0x1] %vm409_vm2, %v901_v1  ;;  %v996_v62 = vld [vmem:[#allocation2] sm:$0xff]  ;;  %v1269_v1 = vld [vmem:[%s4264_s2 + $0x8] sm:$0xff] }
 0x1bd   : > { %892 = vst.msk [vmem:[#allocation2 + $0xc] sm:$0x1] %vm409_vm2, %v869_v2  ;;  %494 = vrot.lane.b32.xlu1 %v3486_v39, %s3259_s15  ;;  %v3039_v2 = vpack.c.bf16 %v1269_v1, %v1268_v0 }
 0x1be   : > { %588 = vrot.lane.b32.xlu0 %v3483_v38, %s3261_s12 }
 0x1bf   : > { %v965_v3 = vpop.permute.xlu1 %964  ;;  %3040 = vmatprep.subr.bf16.mxu1 %v3039_v2 }
 0x1c0   : > { %v933_v4 = vpop.permute.xlu0 %932  ;;  %988 = vst.msk [vmem:[#allocation2 + $0xf] sm:$0x1] %vm409_vm2, %v965_v3  ;;  %3042 = vmatpush3.bf16.msra.mxu1 %v3039_v2 }
 0x1c1   : > { %956 = vst.msk [vmem:[#allocation2 + $0xe] sm:$0x1] %vm409_vm2, %v933_v4  ;;  %558 = vrot.lane.b32.xlu1 %v3486_v39, %s3258_s7 }
 0x1c2   : > { %652 = vrot.lane.b32.xlu0 %v3483_v38, %s3262_s10 }
 0x1c3   : > { %v485_v5 = vpop.permute.xlu1 %484 }
 0x1c4   : > { %v453_v7 = vpop.permute.xlu0 %452  ;;  %507 = vst.msk [vmem:[#allocation2 + $0x12] sm:$0x1] %vm409_vm2, %v485_v5 }
 0x1c5   : > { %475 = vst.msk [vmem:[#allocation2 + $0x11] sm:$0x1] %vm409_vm2, %v453_v7  ;;  %622 = vrot.lane.b32.xlu1 %v3486_v39, %s3260_s11 }
 0x1c6   : > { %462 = vrot.lane.b32.xlu0 %v3486_v39, %s3257_s6 }
 0x1c7   : > { %v549_v9 = vpop.permute.xlu1 %548 }
 0x1c8   : > { %v517_v10 = vpop.permute.xlu0 %516  ;;  %571 = vst.msk [vmem:[#allocation2 + $0x14] sm:$0x1] %vm409_vm2, %v549_v9  ;;  %v997_v4 = vld [vmem:[#allocation2 + $0x8] sm:$0xff] }
 0x1c9   : > { %539 = vst.msk [vmem:[#allocation2 + $0x13] sm:$0x1] %vm409_vm2, %v517_v10  ;;  %778 = vrot.lane.b32.xlu1 %v3506_v47, %s3257_s6 }
 0x1ca   : > { %526 = vrot.lane.b32.xlu0 %v3486_v39, %s3256_s24 }
 0x1cb   : > { %v613_v11 = vpop.permute.xlu1 %612 }
 0x1cc   : > { %v581_v12 = vpop.permute.xlu0 %580  ;;  %635 = vst.msk [vmem:[#allocation2 + $0x16] sm:$0x1] %vm409_vm2, %v613_v11 }
 0x1cd   : > { %603 = vst.msk [vmem:[#allocation2 + $0x15] sm:$0x1] %vm409_vm2, %v581_v12  ;;  %842 = vrot.lane.b32.xlu1 %v3506_v47, %s3256_s24 }
 0x1ce   : > { %590 = vrot.lane.b32.xlu0 %v3486_v39, %s3261_s12 }
 0x1cf   : > { %v487_v13 = vpop.permute.xlu1 %486 }
 0x1d0   : > { %v645_v14 = vpop.permute.xlu0 %644  ;;  %508 = vst.msk [vmem:[#allocation2 + $0x22] sm:$0x1] %vm409_vm2, %v487_v13 }
 0x1d1   : > { %667 = vst.msk [vmem:[#allocation2 + $0x17] sm:$0x1] %vm409_vm2, %v645_v14  ;;  %906 = vrot.lane.b32.xlu1 %v3506_v47, %s3261_s12 }
 0x1d2   : > { %654 = vrot.lane.b32.xlu0 %v3486_v39, %s3262_s10 }
 0x1d3   : > { %v551_v15 = vpop.permute.xlu1 %550 }
 0x1d4   : > { %v455_v16 = vpop.permute.xlu0 %454  ;;  %572 = vst.msk [vmem:[#allocation2 + $0x24] sm:$0x1] %vm409_vm2, %v551_v15 }
 0x1d5   : > { %476 = vst.msk [vmem:[#allocation2 + $0x21] sm:$0x1] %vm409_vm2, %v455_v16  ;;  %970 = vrot.lane.b32.xlu1 %v3506_v47, %s3262_s10 }
 0x1d6   : > { %810 = vrot.lane.b32.xlu0 %v3506_v47, %s3259_s15 }
 0x1d7   : > { %v615_v17 = vpop.permute.xlu1 %614 }
 0x1d8   : > { %v519_v18 = vpop.permute.xlu0 %518  ;;  %636 = vst.msk [vmem:[#allocation2 + $0x26] sm:$0x1] %vm409_vm2, %v615_v17  ;;  %v998_v11 = vld [vmem:[#allocation2 + $0x10] sm:$0xff] }
 0x1d9   : > { %540 = vst.msk [vmem:[#allocation2 + $0x23] sm:$0x1] %vm409_vm2, %v519_v18  ;;  %782 = vrot.lane.b32.xlu1 %v3509_v48, %s3257_s6 }
 0x1da   : > { %874 = vrot.lane.b32.xlu0 %v3506_v47, %s3258_s7 }
 0x1db   : > { %v491_v19 = vpop.permute.xlu1 %490 }
 0x1dc   : > { %v583_v20 = vpop.permute.xlu0 %582  ;;  %510 = vst.msk [vmem:[#allocation2 + $0x42] sm:$0x1] %vm409_vm2, %v491_v19 }
 0x1dd   : > { %604 = vst.msk [vmem:[#allocation2 + $0x25] sm:$0x1] %vm409_vm2, %v583_v20  ;;  %846 = vrot.lane.b32.xlu1 %v3509_v48, %s3256_s24 }
 0x1de   : > { %938 = vrot.lane.b32.xlu0 %v3506_v47, %s3260_s11 }
 0x1df   : > { %v555_v21 = vpop.permute.xlu1 %554 }
 0x1e0   : > { %v647_v22 = vpop.permute.xlu0 %646  ;;  %574 = vst.msk [vmem:[#allocation2 + $0x44] sm:$0x1] %vm409_vm2, %v555_v21 }
 0x1e1   : > { %668 = vst.msk [vmem:[#allocation2 + $0x27] sm:$0x1] %vm409_vm2, %v647_v22  ;;  %910 = vrot.lane.b32.xlu1 %v3509_v48, %s3261_s12 }
 0x1e2   : > { %814 = vrot.lane.b32.xlu0 %v3509_v48, %s3259_s15 }
 0x1e3   : > { %v619_v23 = vpop.permute.xlu1 %618 }
 0x1e4   : > { %v459_v24 = vpop.permute.xlu0 %458  ;;  %638 = vst.msk [vmem:[#allocation2 + $0x46] sm:$0x1] %vm409_vm2, %v619_v23 }
 0x1e5   : > { %478 = vst.msk [vmem:[#allocation2 + $0x41] sm:$0x1] %vm409_vm2, %v459_v24  ;;  %974 = vrot.lane.b32.xlu1 %v3509_v48, %s3262_s10 }
 0x1e6   : > { %878 = vrot.lane.b32.xlu0 %v3509_v48, %s3258_s7 }
 0x1e7   : > { %v775_v25 = vpop.permute.xlu1 %774 }
 0x1e8   : > { %v523_v26 = vpop.permute.xlu0 %522  ;;  %797 = vst.msk [vmem:[#allocation2 + $0x19] sm:$0x1] %vm409_vm2, %v775_v25  ;;  %v1000_v9 = vld [vmem:[#allocation2 + $0x20] sm:$0xff] }
 0x1e9   : > { %542 = vst.msk [vmem:[#allocation2 + $0x43] sm:$0x1] %vm409_vm2, %v523_v26  ;;  %784 = vrot.lane.b32.xlu1 %v3512_v49, %s3257_s6 }
 0x1ea   : > { %942 = vrot.lane.b32.xlu0 %v3509_v48, %s3260_s11 }
 0x1eb   : > { %v839_v27 = vpop.permute.xlu1 %838 }
 0x1ec   : > { %v587_v28 = vpop.permute.xlu0 %586  ;;  %861 = vst.msk [vmem:[#allocation2 + $0x1b] sm:$0x1] %vm409_vm2, %v839_v27 }
 0x1ed   : > { %606 = vst.msk [vmem:[#allocation2 + $0x45] sm:$0x1] %vm409_vm2, %v587_v28  ;;  %848 = vrot.lane.b32.xlu1 %v3512_v49, %s3256_s24 }
 0x1ee   : > { %816 = vrot.lane.b32.xlu0 %v3512_v49, %s3259_s15 }
 0x1ef   : > { %v903_v29 = vpop.permute.xlu1 %902 }
 0x1f0   : > { %v651_v30 = vpop.permute.xlu0 %650  ;;  %925 = vst.msk [vmem:[#allocation2 + $0x1d] sm:$0x1] %vm409_vm2, %v903_v29 }
 0x1f1   : > { %670 = vst.msk [vmem:[#allocation2 + $0x47] sm:$0x1] %vm409_vm2, %v651_v30  ;;  %912 = vrot.lane.b32.xlu1 %v3512_v49, %s3261_s12 }
 0x1f2   : > { %880 = vrot.lane.b32.xlu0 %v3512_v49, %s3258_s7 }
 0x1f3   : > { %v967_v31 = vpop.permute.xlu1 %966 }
 0x1f4   : > { %v807_v32 = vpop.permute.xlu0 %806  ;;  %989 = vst.msk [vmem:[#allocation2 + $0x1f] sm:$0x1] %vm409_vm2, %v967_v31 }
 0x1f5   : > { %829 = vst.msk [vmem:[#allocation2 + $0x1a] sm:$0x1] %vm409_vm2, %v807_v32  ;;  %976 = vrot.lane.b32.xlu1 %v3512_v49, %s3262_s10 }
 0x1f6   : > { %944 = vrot.lane.b32.xlu0 %v3512_v49, %s3260_s11 }
 0x1f7   : > { %v777_v33 = vpop.permute.xlu1 %776 }
 0x1f8   : > { %v871_v34 = vpop.permute.xlu0 %870  ;;  %798 = vst.msk [vmem:[#allocation2 + $0x29] sm:$0x1] %vm409_vm2, %v777_v33  ;;  %v1004_v19 = vld [vmem:[#allocation2 + $0x40] sm:$0xff] }
 0x1f9   : > { %893 = vst.msk [vmem:[#allocation2 + $0x1c] sm:$0x1] %vm409_vm2, %v871_v34  ;;  %496 = vrot.lane.b32.xlu1 %v3493_v43, %s3259_s15 }
 0x1fa   : > { %464 = vrot.lane.b32.xlu0 %v3493_v43, %s3257_s6 }
 0x1fb   : > { %v841_v35 = vpop.permute.xlu1 %840 }
 0x1fc   : > { %v935_v36 = vpop.permute.xlu0 %934  ;;  %862 = vst.msk [vmem:[#allocation2 + $0x2b] sm:$0x1] %vm409_vm2, %v841_v35 }
 0x1fd   : > { %957 = vst.msk [vmem:[#allocation2 + $0x1e] sm:$0x1] %vm409_vm2, %v935_v36  ;;  %560 = vrot.lane.b32.xlu1 %v3493_v43, %s3258_s7 }
 0x1fe   : > { %528 = vrot.lane.b32.xlu0 %v3493_v43, %s3256_s24 }
 0x1ff   : > { %v905_v37 = vpop.permute.xlu1 %904 }
 0x200   : > { %v809_v38 = vpop.permute.xlu0 %808  ;;  %926 = vst.msk [vmem:[#allocation2 + $0x2d] sm:$0x1] %vm409_vm2, %v905_v37 }
 0x201   : > { %830 = vst.msk [vmem:[#allocation2 + $0x2a] sm:$0x1] %vm409_vm2, %v809_v38  ;;  %624 = vrot.lane.b32.xlu1 %v3493_v43, %s3260_s11 }
 0x202   : > { %592 = vrot.lane.b32.xlu0 %v3493_v43, %s3261_s12 }
 0x203   : > { %v969_v39 = vpop.permute.xlu1 %968 }
 0x204   : > { %v873_v40 = vpop.permute.xlu0 %872  ;;  %990 = vst.msk [vmem:[#allocation2 + $0x2f] sm:$0x1] %vm409_vm2, %v969_v39  ;;  %v999_v15 = vld [vmem:[#allocation2 + $0x18] sm:$0xff] }
 0x205   : > { %894 = vst.msk [vmem:[#allocation2 + $0x2c] sm:$0x1] %vm409_vm2, %v873_v40  ;;  %786 = vrot.lane.b32.xlu1 %v3515_v50, %s3257_s6  ;;  %s4210_s6 = scalar_lea.hbm %s4266_s4, %s2906_s26 }
 0x206   : > { %656 = vrot.lane.b32.xlu0 %v3493_v43, %s3262_s10 }
 0x207   : > { %v781_v41 = vpop.permute.xlu1 %780 }
 0x208   : > { %v937_v42 = vpop.permute.xlu0 %936  ;;  %800 = vst.msk [vmem:[#allocation2 + $0x49] sm:$0x1] %vm409_vm2, %v781_v41 }
 0x209   : > { %958 = vst.msk [vmem:[#allocation2 + $0x2e] sm:$0x1] %vm409_vm2, %v937_v42  ;;  %850 = vrot.lane.b32.xlu1 %v3515_v50, %s3256_s24 }
 0x20a   : > { %818 = vrot.lane.b32.xlu0 %v3515_v50, %s3259_s15  ;;  %s2710_s15 = scalar_lea.sflag [#allocation5], %s3432_s16 }
 0x20b   : > { %v845_v44 = vpop.permute.xlu1 %844 }
 0x20c   : > { %v813_v45 = vpop.permute.xlu0 %812  ;;  %864 = vst.msk [vmem:[#allocation2 + $0x4b] sm:$0x1] %vm409_vm2, %v845_v44 }
 0x20d   : > { %832 = vst.msk [vmem:[#allocation2 + $0x4a] sm:$0x1] %vm409_vm2, %v813_v45  ;;  %914 = vrot.lane.b32.xlu1 %v3515_v50, %s3261_s12  ;;  %s3263_s12 = smov [#allocation8]  }
 0x20e   : > { %882 = vrot.lane.b32.xlu0 %v3515_v50, %s3258_s7  ;;  %s2727_s7 = sshll.u32 %s3871_s27, 4  ;;  %s4213_s7 = int_to_ptr.vmem [resolvable:$true] %s2727_s7 }
 0x20f   : > { %v909_v43 = vpop.permute.xlu1 %908 }
 0x210   : > { %v877_v46 = vpop.permute.xlu0 %876  ;;  %928 = vst.msk [vmem:[#allocation2 + $0x4d] sm:$0x1] %vm409_vm2, %v909_v43  ;;  %v1001_v13 = vld [vmem:[#allocation2 + $0x28] sm:$0xff] }
 0x211   : > { %896 = vst.msk [vmem:[#allocation2 + $0x4c] sm:$0x1] %vm409_vm2, %v877_v46  ;;  %978 = vrot.lane.b32.xlu1 %v3515_v50, %s3262_s10  ;;  %s3182_s10 = sshll.u32 %s3263_s12, 4  ;;  %s3183_s10 = int_to_ptr.vmem [resolvable:$false] %s3182_s10 }
 0x212   : > { %946 = vrot.lane.b32.xlu0 %v3515_v50, %s3260_s11  ;;  %s3178_s11 = scalar_lea.vmem %s4213_s7, 4096  ;;  %s3184_s29 = scalar_lea.vmem %s3183_s10, 8192 }
 0x213   : > { %v973_v47 = vpop.permute.xlu1 %972  ;;  %p3179_p4 = scmp.ne.s32.totalorder %s4213_s7, %s3178_s11  ;;  %p3185_p10 = scmp.lt.s32.totalorder %s4213_s7, %s3183_s10 }
 0x214   : > { %v941_v48 = vpop.permute.xlu0 %940  ;;  %992 = vst.msk [vmem:[#allocation2 + $0x4f] sm:$0x1] %vm409_vm2, %v973_v47  ;;  %p3186_p13 = scmp.lt.s32.totalorder %s3184_s29, %s3178_s11 }
 0x215   : > { %960 = vst.msk [vmem:[#allocation2 + $0x4e] sm:$0x1] %vm409_vm2, %v941_v48  ;;  %p3180_p6 = pnand %p3179_p4, %p3387_p12 }
 0x216   : > { %p3187_p3 = por %p3186_p13, %p3185_p10 }
 0x217   : > { %v489_v49 = vpop.permute.xlu1 %488  ;;  %p3181_p8 = pneg %p3180_p6 }
 0x218   : > { %v457_v51 = vpop.permute.xlu0 %456  ;;  %509 = vst.msk [vmem:[#allocation2 + $0x32] sm:$0x1] %vm409_vm2, %v489_v49 }
 0x219   : > { %477 = vst.msk [vmem:[#allocation2 + $0x31] sm:$0x1] %vm409_vm2, %v457_v51  ;;  %p3188_p7 = pnand %p3187_p3, %p3181_p8 }
 0x21b   : > { %v553_v52 = vpop.permute.xlu1 %552 }
 0x21c   : > { %v521_v53 = vpop.permute.xlu0 %520  ;;  %573 = vst.msk [vmem:[#allocation2 + $0x34] sm:$0x1] %vm409_vm2, %v553_v52  ;;  %v1005_v22 = vld [vmem:[#allocation2 + $0x48] sm:$0xff] }
 0x21d   : > { %541 = vst.msk [vmem:[#allocation2 + $0x33] sm:$0x1] %vm409_vm2, %v521_v53 }
 0x21f   : > { %v617_v54 = vpop.permute.xlu1 %616 }
 0x220   : > { %v585_v50 = vpop.permute.xlu0 %584  ;;  %637 = vst.msk [vmem:[#allocation2 + $0x36] sm:$0x1] %vm409_vm2, %v617_v54 }
 0x221   : > { %605 = vst.msk [vmem:[#allocation2 + $0x35] sm:$0x1] %vm409_vm2, %v585_v50 }
 0x223   : > { %v493_v55 = vpop.permute.xlu1 %492 }
 0x224   : > { %v649_v56 = vpop.permute.xlu0 %648  ;;  %511 = vst.msk [vmem:[#allocation2 + $0x52] sm:$0x1] %vm409_vm2, %v493_v55 }
 0x225   : > { %669 = vst.msk [vmem:[#allocation2 + $0x37] sm:$0x1] %vm409_vm2, %v649_v56 }
 0x227   : > { %v557_v57 = vpop.permute.xlu1 %556 }
 0x228   : > { %v461_v58 = vpop.permute.xlu0 %460  ;;  %575 = vst.msk [vmem:[#allocation2 + $0x54] sm:$0x1] %vm409_vm2, %v557_v57 }
 0x229   : > { %479 = vst.msk [vmem:[#allocation2 + $0x51] sm:$0x1] %vm409_vm2, %v461_v58 }
 0x22b   : > { %v621_v59 = vpop.permute.xlu1 %620 }
 0x22c   : > { %v525_v60 = vpop.permute.xlu0 %524  ;;  %639 = vst.msk [vmem:[#allocation2 + $0x56] sm:$0x1] %vm409_vm2, %v621_v59  ;;  %v1002_v17 = vld [vmem:[#allocation2 + $0x30] sm:$0xff] }
 0x22d   : > { %543 = vst.msk [vmem:[#allocation2 + $0x53] sm:$0x1] %vm409_vm2, %v525_v60 }
 0x22f   : > { %v495_v61 = vpop.permute.xlu1 %494 }
 0x230   : > { %v589_v63 = vpop.permute.xlu0 %588  ;;  %512 = vst.msk [vmem:[#allocation2 + $0x62] sm:$0x1] %vm409_vm2, %v495_v61  ;;  %1012 = vxpose.xlu0.b32.start [1/2] (short) (narrow) %v996_v62, 16 }
 0x231   : > { %607 = vst.msk [vmem:[#allocation2 + $0x55] sm:$0x1] %vm409_vm2, %v589_v63 }
 0x233   : > { %v559_v3 = vpop.permute.xlu1 %558 }
 0x234   : > { %v653_v5 = vpop.permute.xlu0 %652  ;;  %576 = vst.msk [vmem:[#allocation2 + $0x64] sm:$0x1] %vm409_vm2, %v559_v3  ;;  %1013 = vxpose.xlu0.b32.end [2/2] (short) (narrow) %v997_v4, 16 }
 0x235   : > { %671 = vst.msk [vmem:[#allocation2 + $0x57] sm:$0x1] %vm409_vm2, %v653_v5 }
 0x237   : > { %v623_v7 = vpop.permute.xlu1 %622 }
 0x238   : > { %v463_v10 = vpop.permute.xlu0 %462  ;;  %640 = vst.msk [vmem:[#allocation2 + $0x66] sm:$0x1] %vm409_vm2, %v623_v7  ;;  %1076 = vxpose.xlu0.b32.start [1/2] (short) (narrow) %v1000_v9, 16 }
 0x239   : > { %480 = vst.msk [vmem:[#allocation2 + $0x61] sm:$0x1] %vm409_vm2, %v463_v10 }
 0x23a   : > { %1044 = vxpose.xlu1.b32.start [1/2] (short) (narrow) %v998_v11, 16 }
 0x23b   : > { %v779_v12 = vpop.permute.xlu1 %778 }
 0x23c   : > { %v527_v14 = vpop.permute.xlu0 %526  ;;  %799 = vst.msk [vmem:[#allocation2 + $0x39] sm:$0x1] %vm409_vm2, %v779_v12  ;;  %1077 = vxpose.xlu0.b32.end [2/2] (short) (narrow) %v1001_v13, 16  ;;  %v1006_v37 = vld [vmem:[#allocation2 + $0x50] sm:$0xff] }
 0x23d   : > { %544 = vst.msk [vmem:[#allocation2 + $0x63] sm:$0x1] %vm409_vm2, %v527_v14 }
 0x23e   : > { %1045 = vxpose.xlu1.b32.end [2/2] (short) (narrow) %v999_v15, 16 }
 0x23f   : > { %v843_v16 = vpop.permute.xlu1 %842 }
 0x240   : > { %v591_v18 = vpop.permute.xlu0 %590  ;;  %863 = vst.msk [vmem:[#allocation2 + $0x3b] sm:$0x1] %vm409_vm2, %v843_v16  ;;  %1108 = vxpose.xlu0.b32.start [1/2] (short) (narrow) %v1002_v17, 16 }
 0x241   : > { %608 = vst.msk [vmem:[#allocation2 + $0x65] sm:$0x1] %vm409_vm2, %v591_v18  ;;  %v1720_v18 = vld [vmem:[#allocation6] sm:$0xff] }
 0x242   : > { %1140 = vxpose.xlu1.b32.start [1/2] (short) (narrow) %v1004_v19, 16  ;;  %v1721_v19 = vld [vmem:[#allocation6 + $0x8] sm:$0xff] }
 0x243   : > { %v907_v20 = vpop.permute.xlu1 %906 }
 0x244   : > { %v655_v21 = vpop.permute.xlu0 %654  ;;  %927 = vst.msk [vmem:[#allocation2 + $0x3d] sm:$0x1] %vm409_vm2, %v907_v20  ;;  %v3043_v20 = vpack.c.bf16 %v1721_v19, %v1720_v18 }
 0x245   : > { %672 = vst.msk [vmem:[#allocation2 + $0x67] sm:$0x1] %vm409_vm2, %v655_v21 }
 0x246   : > { %1141 = vxpose.xlu1.b32.end [2/2] (short) (narrow) %v1005_v22, 16  ;;  %3044 = vmatprep.subr.bf16.mxu0 %v3043_v20 }
 0x247   : > { %v971_v23 = vpop.permute.xlu1 %970  ;;  %3047 = vmatprep.subr.bf16.mxu1 %v3043_v20  ;;  %3046 = vmatpush3.bf16.msra.mxu0 %v3043_v20 }
 0x248   : > { %v811_v24 = vpop.permute.xlu0 %810  ;;  %991 = vst.msk [vmem:[#allocation2 + $0x3f] sm:$0x1] %vm409_vm2, %v971_v23 }
 0x249   : > { %831 = vst.msk [vmem:[#allocation2 + $0x3a] sm:$0x1] %vm409_vm2, %v811_v24 }
 0x24b   : > { %v783_v25 = vpop.permute.xlu1 %782 }
 0x24c   : > { %v875_v26 = vpop.permute.xlu0 %874  ;;  %801 = vst.msk [vmem:[#allocation2 + $0x59] sm:$0x1] %vm409_vm2, %v783_v25  ;;  %v1008_v27 = vld [vmem:[#allocation2 + $0x60] sm:$0xff] }
 0x24d   : > { %895 = vst.msk [vmem:[#allocation2 + $0x3c] sm:$0x1] %vm409_vm2, %v875_v26  ;;  %1204 = vxpose.xlu1.b32.start [1/2] (short) (narrow) %v1008_v27, 16 }
 0x24f   : > { %v847_v28 = vpop.permute.xlu1 %846 }
 0x250   : > { %v939_v29 = vpop.permute.xlu0 %938  ;;  %865 = vst.msk [vmem:[#allocation2 + $0x5b] sm:$0x1] %vm409_vm2, %v847_v28 }
 0x251   : > { %959 = vst.msk [vmem:[#allocation2 + $0x3e] sm:$0x1] %vm409_vm2, %v939_v29 }
 0x253   : > { %v911_v30 = vpop.permute.xlu1 %910 }
 0x254   : > { %v815_v31 = vpop.permute.xlu0 %814  ;;  %929 = vst.msk [vmem:[#allocation2 + $0x5d] sm:$0x1] %vm409_vm2, %v911_v30 }
 0x255   : > { %833 = vst.msk [vmem:[#allocation2 + $0x5a] sm:$0x1] %vm409_vm2, %v815_v31 }
 0x257   : > { %v975_v32 = vpop.permute.xlu1 %974 }
 0x258   : > { %v879_v33 = vpop.permute.xlu0 %878  ;;  %993 = vst.msk [vmem:[#allocation2 + $0x5f] sm:$0x1] %vm409_vm2, %v975_v32  ;;  %v1003_v34 = vld [vmem:[#allocation2 + $0x38] sm:$0xff] }
 0x259   : > { %897 = vst.msk [vmem:[#allocation2 + $0x5c] sm:$0x1] %vm409_vm2, %v879_v33  ;;  %1109 = vxpose.xlu0.b32.end [2/2] (short) (narrow) %v1003_v34, 16 }
 0x25b   : > { %v785_v35 = vpop.permute.xlu1 %784 }
 0x25c   : > { %v943_v36 = vpop.permute.xlu0 %942  ;;  %802 = vst.msk [vmem:[#allocation2 + $0x69] sm:$0x1] %vm409_vm2, %v785_v35 }
 0x25d   : > { %961 = vst.msk [vmem:[#allocation2 + $0x5e] sm:$0x1] %vm409_vm2, %v943_v36  ;;  %1172 = vxpose.xlu0.b32.start [1/2] (short) (narrow) %v1006_v37, 16 }
 0x25f   : > { %v849_v38 = vpop.permute.xlu1 %848 }
 0x260   : > { %v817_v39 = vpop.permute.xlu0 %816  ;;  %866 = vst.msk [vmem:[#allocation2 + $0x6b] sm:$0x1] %vm409_vm2, %v849_v38 }
 0x261   : > { %834 = vst.msk [vmem:[#allocation2 + $0x6a] sm:$0x1] %vm409_vm2, %v817_v39 }
 0x263   : > { %v913_v40 = vpop.permute.xlu1 %912 }
 0x264   : > { %v881_v41 = vpop.permute.xlu0 %880  ;;  %930 = vst.msk [vmem:[#allocation2 + $0x6d] sm:$0x1] %vm409_vm2, %v913_v40  ;;  %v1007_v42 = vld [vmem:[#allocation2 + $0x58] sm:$0xff] }
 0x265   : > { %898 = vst.msk [vmem:[#allocation2 + $0x6c] sm:$0x1] %vm409_vm2, %v881_v41  ;;  %1173 = vxpose.xlu0.b32.end [2/2] (short) (narrow) %v1007_v42, 16 }
 0x267   : > { %v977_v44 = vpop.permute.xlu1 %976 }
 0x268   : > { %v945_v45 = vpop.permute.xlu0 %944  ;;  %994 = vst.msk [vmem:[#allocation2 + $0x6f] sm:$0x1] %vm409_vm2, %v977_v44 }
 0x269   : > { %962 = vst.msk [vmem:[#allocation2 + $0x6e] sm:$0x1] %vm409_vm2, %v945_v45 }
 0x26b   : > { %v497_v43 = vpop.permute.xlu1 %496 }
 0x26c   : > { %v465_v46 = vpop.permute.xlu0 %464  ;;  %513 = vst.msk [vmem:[#allocation2 + $0x72] sm:$0x1] %vm409_vm2, %v497_v43 }
 0x26d   : > { %481 = vst.msk [vmem:[#allocation2 + $0x71] sm:$0x1] %vm409_vm2, %v465_v46 }
 0x26f   : > { %v561_v47 = vpop.permute.xlu1 %560 }
 0x270   : > { %v529_v48 = vpop.permute.xlu0 %528  ;;  %577 = vst.msk [vmem:[#allocation2 + $0x74] sm:$0x1] %vm409_vm2, %v561_v47  ;;  %v1009_v49 = vld [vmem:[#allocation2 + $0x68] sm:$0xff] }
 0x271   : > { %545 = vst.msk [vmem:[#allocation2 + $0x73] sm:$0x1] %vm409_vm2, %v529_v48  ;;  %1205 = vxpose.xlu1.b32.end [2/2] (short) (narrow) %v1009_v49, 16 }
 0x273   : > { %v625_v51 = vpop.permute.xlu1 %624 }
 0x274   : > { %v593_v52 = vpop.permute.xlu0 %592  ;;  %641 = vst.msk [vmem:[#allocation2 + $0x76] sm:$0x1] %vm409_vm2, %v625_v51 }
 0x275   : > { %609 = vst.msk [vmem:[#allocation2 + $0x75] sm:$0x1] %vm409_vm2, %v593_v52 }
 0x277   : > { %v787_v53 = vpop.permute.xlu1 %786 }
 0x278   : > { %v657_v54 = vpop.permute.xlu0 %656  ;;  %803 = vst.msk [vmem:[#allocation2 + $0x79] sm:$0x1] %vm409_vm2, %v787_v53 }
 0x279   : > { %673 = vst.msk [vmem:[#allocation2 + $0x77] sm:$0x1] %vm409_vm2, %v657_v54 }
 0x27b   : > { %v851_v50 = vpop.permute.xlu1 %850 }
 0x27c   : > { %v819_v55 = vpop.permute.xlu0 %818  ;;  %867 = vst.msk [vmem:[#allocation2 + $0x7b] sm:$0x1] %vm409_vm2, %v851_v50 }
 0x27d   : > { %835 = vst.msk [vmem:[#allocation2 + $0x7a] sm:$0x1] %vm409_vm2, %v819_v55 }
 0x27f   : > { %v915_v56 = vpop.permute.xlu1 %914 }
 0x280   : > { %v883_v57 = vpop.permute.xlu0 %882  ;;  %931 = vst.msk [vmem:[#allocation2 + $0x7d] sm:$0x1] %vm409_vm2, %v915_v56  ;;  %v1010_v58 = vld [vmem:[#allocation2 + $0x70] sm:$0xff] }
 0x281   : > { %899 = vst.msk [vmem:[#allocation2 + $0x7c] sm:$0x1] %vm409_vm2, %v883_v57  ;;  %1236 = vxpose.xlu0.b32.start [1/2] (short) (narrow) %v1010_v58, 16 }
 0x283   : > { %v979_v59 = vpop.permute.xlu1 %978 }
 0x284   : > { %v947_v60 = vpop.permute.xlu0 %946  ;;  %995 = vst.msk [vmem:[#allocation2 + $0x7f] sm:$0x1] %vm409_vm2, %v979_v59 }
 0x285   : > { %963 = vst.msk [vmem:[#allocation2 + $0x7e] sm:$0x1] %vm409_vm2, %v947_v60 }
 0x28c   : > { %v1011_v61 = vld [vmem:[#allocation2 + $0x78] sm:$0xff] }
 0x28d   : > { %1237 = vxpose.xlu0.b32.end [2/2] (short) (narrow) %v1011_v61, 16 }
 0x2b0   : > { %v1028_v62 = vpop.trf.xlu0 }
 0x2b1   : > { %2963 = vmatprep.mubr.msk.f32.mxu1 %vm1270_vm3, %v1028_v62 }
 0x2b4   : > { %v1029_v63 = vpop.trf.xlu0 }
 0x2b5   : > { %2964 = vmatmul.mubr.msk.f32.vlgmr.msra.gmra.mrb[0].mxu1 %vm1270_vm3, %v1029_v63 }
 0x2b6   : > { %3048 = vmatpush3.bf16.msra.mxu1 %v3043_v20 }
 0x2b8   : > { %v1092_v1 = vpop.trf.xlu0 }
 0x2ba   : > { %v1060_v0 = vpop.trf.xlu1 }
 0x2bb   : > { %2966 = vmatprep.mubr.msk.f32.mxu1 %vm1270_vm3, %v1060_v0 }
 0x2bc   : > { %v1093_v3 = vpop.trf.xlu0 }
 0x2be   : > { %v1061_v2 = vpop.trf.xlu1 }
 0x2bf   : > { %2967 = vmatmul.mubr.msk.f32.gmra.mrb[2].mxu1 %vm1270_vm3, %v1061_v2 }
 0x2c0   : > { %2969 = vmatprep.mubr.msk.f32.mxu1 %vm1270_vm3, %v1092_v1 }
 0x2c2   : > { %v1156_v5 = vpop.trf.xlu1 }
 0x2c3   : > { %2970 = vmatmul.mubr.msk.f32.gmra.mrb[4].mxu1 %vm1270_vm3, %v1093_v3 }
 0x2c6   : > { %v1157_v9 = vpop.trf.xlu1 }
 0x2d5   : > { %v1124_v4 = vpop.trf.xlu0 }
 0x2d6   : > { %2972 = vmatprep.mubr.msk.f32.mxu1 %vm1270_vm3, %v1124_v4 }
 0x2d9   : > { %v1125_v7 = vpop.trf.xlu0 }
 0x2da   : > { %2973 = vmatmul.mubr.msk.f32.gmra.mrb[6].mxu1 %vm1270_vm3, %v1125_v7 }
 0x2db   : > { %2975 = vmatprep.mubr.msk.f32.mxu1 %vm1270_vm3, %v1156_v5 }
 0x2de   : > { %2976 = vmatmul.mubr.msk.f32.gmra.mrb[8].mxu1 %vm1270_vm3, %v1157_v9 }
 0x2e1   : > { %v1188_v10 = vpop.trf.xlu0 }
 0x2e2   : > { %2978 = vmatprep.mubr.msk.f32.mxu1 %vm1270_vm3, %v1188_v10 }
 0x2e5   : > { %v1189_v11 = vpop.trf.xlu0 }
 0x2e6   : > { %2979 = vmatmul.mubr.msk.f32.gmra.mrb[10].mxu1 %vm1270_vm3, %v1189_v11 }
 0x2ed   : > { %v1220_v12 = vpop.trf.xlu1 }
 0x2ee   : > { %2981 = vmatprep.mubr.msk.f32.mxu1 %vm1270_vm3, %v1220_v12 }
 0x2f1   : > { %v1221_v13 = vpop.trf.xlu1 }
 0x2f2   : > { %2982 = vmatmul.mubr.msk.f32.gmra.mrb[12].mxu1 %vm1270_vm3, %v1221_v13 }
 0x309   : > { %v1252_v14 = vpop.trf.xlu0 }
 0x30a   : > { %2984 = vmatprep.mubr.msk.f32.mxu1 %vm1270_vm3, %v1252_v14 }
 0x30d   : > { %v1253_v15 = vpop.trf.xlu0 }
 0x30e   : > { %2985 = vmatmul.mubr.msk.f32.gmra.mrb[14].mxu1 %vm1270_vm3, %v1253_v15 }
 0x388   : > { %v2965_v16 = vpop.f32.mrb[0].mxu1 }
 0x389   : > { %v1385_v17 = vpop.f32.mrb[1].mxu1 }
 0x38a   : > { %1464 = vxpose.xlu1.b32.start [1/2] (short) (narrow) %v1385_v17, 32 }
 0x38e   : > { %1465 = vxpose.xlu1.b32.end [2/2] (short) (narrow) %v2965_v16, 32 }
 0x392   : > { %v2968_v21 = vpop.f32.mrb[2].mxu1 }
 0x393   : > { %v1395_v22 = vpop.f32.mrb[3].mxu1 }
 0x394   : > { %1496 = vxpose.xlu0.b32.start [1/2] (short) (narrow) %v1395_v22, 32 }
 0x396   : > { %v2971_v23 = vpop.f32.mrb[4].mxu1 }
 0x397   : > { %v1405_v24 = vpop.f32.mrb[5].mxu1 }
 0x398   : > { %1497 = vxpose.xlu0.b32.end [2/2] (short) (narrow) %v2968_v21, 32  ;;  %1528 = vxpose.xlu1.b32.start [1/2] (short) (narrow) %v1405_v24, 32 }
 0x39c   : > { %1529 = vxpose.xlu1.b32.end [2/2] (short) (narrow) %v2971_v23, 32 }
 0x3ad   : > { %v2974_v25 = vpop.f32.mrb[6].mxu1 }
 0x3ae   : > { %v1415_v26 = vpop.f32.mrb[7].mxu1 }
 0x3af   : > { %1560 = vxpose.xlu0.b32.start [1/2] (short) (narrow) %v1415_v26, 32 }
 0x3b1   : > { %v2977_v27 = vpop.f32.mrb[8].mxu1 }
 0x3b2   : > { %v1425_v28 = vpop.f32.mrb[9].mxu1 }
 0x3b3   : > { %1592 = vxpose.xlu1.b32.start [1/2] (short) (narrow) %v1425_v28, 32  ;;  %1561 = vxpose.xlu0.b32.end [2/2] (short) (narrow) %v2974_v25, 32 }
 0x3b7   : > { %1593 = vxpose.xlu1.b32.end [2/2] (short) (narrow) %v2977_v27, 32 }
 0x3b9   : > { %v2980_v29 = vpop.f32.mrb[10].mxu1 }
 0x3ba   : > { %v1435_v30 = vpop.f32.mrb[11].mxu1 }
 0x3c0   : > { %1624 = vxpose.xlu1.b32.start [1/2] (short) (narrow) %v1435_v30, 32 }
 0x3c4   : > { %1625 = vxpose.xlu1.b32.end [2/2] (short) (narrow) %v2980_v29, 32 }
 0x3c5   : > { %v2983_v31 = vpop.f32.mrb[12].mxu1 }
 0x3c6   : > { %v1445_v32 = vpop.f32.mrb[13].mxu1 }
 0x3c7   : > { %1656 = vxpose.xlu0.b32.start [1/2] (short) (narrow) %v1445_v32, 32 }
 0x3cb   : > { %1657 = vxpose.xlu0.b32.end [2/2] (short) (narrow) %v2983_v31, 32 }
 0x3e1   : > { %v2986_v33 = vpop.f32.mrb[14].mxu1 }
 0x3e2   : > { %v1455_v34 = vpop.f32.mrb[15].mxu1 }
 0x3e3   : > { %1688 = vxpose.xlu0.b32.start [1/2] (short) (narrow) %v1455_v34, 32 }
 0x3e7   : > { %1689 = vxpose.xlu0.b32.end [2/2] (short) (narrow) %v2986_v33, 32 }
 0x40a   : > { %v1480_v35 = vpop.trf.xlu1 }
 0x40b   : > { %2991 = vmatprep.mubr.msk.f32.mxu0 %vm1270_vm3, %v1480_v35 }
 0x40e   : > { %v1481_v36 = vpop.trf.xlu1 }
 0x40f   : > { %2992 = vmatmul.mubr.msk.f32.vlgmr.msra.gmra.mrb[2].mxu0 %vm1270_vm3, %v1481_v36 }
 0x412   : > { %v1482_v37 = vpop.trf.xlu1 }
 0x413   : > { %2994 = vmatprep.mubr.msk.f32.mxu0 %vm1270_vm3, %v1482_v37 }
 0x414   : > { %v1512_v38 = vpop.trf.xlu0 }
 0x416   : > { %v1483_v39 = vpop.trf.xlu1 }
 0x417   : > { %2995 = vmatmul.mubr.msk.f32.gmra.mrb[4].mxu0 %vm1270_vm3, %v1483_v39 }
 0x418   : > { %v1513_v40 = vpop.trf.xlu0  ;;  %2997 = vmatprep.mubr.msk.f32.mxu0 %vm1270_vm3, %v1512_v38 }
 0x41a   : > { %v1544_v41 = vpop.trf.xlu1 }
 0x41b   : > { %2998 = vmatmul.mubr.msk.f32.gmra.mrb[6].mxu0 %vm1270_vm3, %v1513_v40 }
 0x41c   : > { %v1514_v42 = vpop.trf.xlu0 }
 0x41d   : > { %3000 = vmatprep.mubr.msk.f32.mxu0 %vm1270_vm3, %v1514_v42 }
 0x41e   : > { %v1545_v44 = vpop.trf.xlu1 }
 0x420   : > { %v1515_v45 = vpop.trf.xlu0 }
 0x421   : > { %3001 = vmatmul.mubr.msk.f32.gmra.mrb[8].mxu0 %vm1270_vm3, %v1515_v45 }
 0x422   : > { %v1546_v43 = vpop.trf.xlu1  ;;  %3003 = vmatprep.mubr.msk.f32.mxu0 %vm1270_vm3, %v1544_v41 }
 0x425   : > { %3004 = vmatmul.mubr.msk.f32.gmra.mrb[10].mxu0 %vm1270_vm3, %v1545_v44 }
 0x426   : > { %v1547_v46 = vpop.trf.xlu1  ;;  %3006 = vmatprep.mubr.msk.f32.mxu0 %vm1270_vm3, %v1546_v43 }
 0x429   : > { %3007 = vmatmul.mubr.msk.f32.gmra.mrb[12].mxu0 %vm1270_vm3, %v1547_v46 }
 0x42f   : > { %v1576_v47 = vpop.trf.xlu0 }
 0x430   : > { %3009 = vmatprep.mubr.msk.f32.mxu0 %vm1270_vm3, %v1576_v47 }
 0x433   : > { %v1577_v48 = vpop.trf.xlu0  ;;  %v1608_v49 = vpop.trf.xlu1 }
 0x434   : > { %3010 = vmatmul.mubr.msk.f32.gmra.mrb[14].mxu0 %vm1270_vm3, %v1577_v48 }
 0x437   : > { %v1578_v51 = vpop.trf.xlu0  ;;  %v1609_v52 = vpop.trf.xlu1 }
 0x438   : > { %3012 = vmatprep.mubr.msk.f32.mxu0 %vm1270_vm3, %v1578_v51 }
 0x43b   : > { %v1579_v53 = vpop.trf.xlu0  ;;  %v1610_v54 = vpop.trf.xlu1 }
 0x43c   : > { %3013 = vmatmul.mubr.msk.f32.gmra.mrb[16].mxu0 %vm1270_vm3, %v1579_v53 }
 0x43d   : > { %3015 = vmatprep.mubr.msk.f32.mxu0 %vm1270_vm3, %v1608_v49 }
 0x43f   : > { %v1611_v50 = vpop.trf.xlu1 }
 0x440   : > { %3016 = vmatmul.mubr.msk.f32.gmra.mrb[18].mxu0 %vm1270_vm3, %v1609_v52 }
 0x441   : > { %3018 = vmatprep.mubr.msk.f32.mxu0 %vm1270_vm3, %v1610_v54 }
 0x443   : > { %v1640_v55 = vpop.trf.xlu1 }
 0x444   : > { %3019 = vmatmul.mubr.msk.f32.gmra.mrb[20].mxu0 %vm1270_vm3, %v1611_v50 }
 0x445   : > { %3021 = vmatprep.mubr.msk.f32.mxu0 %vm1270_vm3, %v1640_v55 }
 0x447   : > { %v1672_v56 = vpop.trf.xlu0  ;;  %v1641_v57 = vpop.trf.xlu1 }
 0x448   : > { %3027 = vmatprep.mubr.msk.f32.mxu1 %vm1270_vm3, %v1672_v56  ;;  %3022 = vmatmul.mubr.msk.f32.gmra.mrb[22].mxu0 %vm1270_vm3, %v1641_v57 }
 0x44b   : > { %v1673_v58 = vpop.trf.xlu0  ;;  %v1642_v59 = vpop.trf.xlu1 }
 0x44c   : > { %3028 = vmatmul.mubr.msk.f32.vlgmr.msra.gmra.mrb[16].mxu1 %vm1270_vm3, %v1673_v58  ;;  %3024 = vmatprep.mubr.msk.f32.mxu0 %vm1270_vm3, %v1642_v59 }
 0x44f   : > { %v1674_v60 = vpop.trf.xlu0  ;;  %v1643_v61 = vpop.trf.xlu1 }
 0x450   : > { %3030 = vmatprep.mubr.msk.f32.mxu1 %vm1270_vm3, %v1674_v60  ;;  %3025 = vmatmul.mubr.msk.f32.gmra.mrb[24].mxu0 %vm1270_vm3, %v1643_v61 }
 0x453   : > { %v1675_v62 = vpop.trf.xlu0 }
 0x454   : > { %3031 = vmatmul.mubr.msk.f32.gmra.mrb[18].mxu1 %vm1270_vm3, %v1675_v62 }
 0x463   : > { %v1704_v63 = vpop.trf.xlu0 }
 0x464   : > { %3033 = vmatprep.mubr.msk.f32.mxu1 %vm1270_vm3, %v1704_v63 }
 0x467   : > { %v1705_v0 = vpop.trf.xlu0 }
 0x468   : > { %3034 = vmatmul.mubr.msk.f32.gmra.mrb[20].mxu1 %vm1270_vm3, %v1705_v0 }
 0x46b   : > { %v1706_v1 = vpop.trf.xlu0 }
 0x46c   : > { %3036 = vmatprep.mubr.msk.f32.mxu1 %vm1270_vm3, %v1706_v1 }
 0x46f   : > { %v1707_v2 = vpop.trf.xlu0 }
 0x470   : > { %3037 = vmatmul.mubr.msk.f32.gmra.mrb[22].mxu1 %vm1270_vm3, %v1707_v2 }
 0x4e2   : > { %v2993_v3 = vpop.f32.mrb[2].mxu0 }
 0x4e3   : > { %2045 = vst.msk [vmem:[%s3871_s27 + $0x8] sm:$0xff] %vm2043_vm4, %v2993_v3  ;;  %v2383_v4 = vmul.f32 %v2993_v3, %v2993_v3  ;;  %v1884_v5 = vpop.f32.mrb[3].mxu0  ;;  %v2079_v7 = vsel %vm2043_vm4, %v2993_v3, 0.0 }
 0x4e4   : > { %2044 = vst.msk [vmem:[%s3871_s27] sm:$0xff] %vm2043_vm4, %v1884_v5  ;;  %v2382_v9 = vmul.f32 %v1884_v5, %v1884_v5  ;;  %v2076_v10 = vsel %vm2043_vm4, %v1884_v5, 0.0  ;;  %2080 = vadd.xlane.f32.xlu0 %v2079_v7 }
 0x4e5   : > { %2077 = vadd.xlane.f32.xlu1 %v2076_v10  ;;  %v2417_v11 = vsel %vm2043_vm4, %v2383_v4, 0.0 }
 0x4e6   : > { %v2414_v12 = vsel %vm2043_vm4, %v2382_v9, 0.0 }
 0x4e8   : > { %2418 = vadd.xlane.f32.xlu0 %v2417_v11 }
 0x4e9   : > { %2415 = vadd.xlane.f32.xlu1 %v2414_v12 }
 0x4ea   : > { %v2996_v13 = vpop.f32.mrb[4].mxu0 }
 0x4eb   : > { %2047 = vst.msk [vmem:[%s3871_s27 + $0x18] sm:$0xff] %vm2043_vm4, %v2996_v13  ;;  %v2385_v14 = vmul.f32 %v2996_v13, %v2996_v13  ;;  %v2085_v15 = vsel %vm2043_vm4, %v2996_v13, 0.0  ;;  %v1894_v16 = vpop.f32.mrb[5].mxu0 }
 0x4ec   : > { %2046 = vst.msk [vmem:[%s3871_s27 + $0x10] sm:$0xff] %vm2043_vm4, %v1894_v16  ;;  %v2384_v18 = vmul.f32 %v1894_v16, %v1894_v16  ;;  %v2082_v19 = vsel %vm2043_vm4, %v1894_v16, 0.0 }
 0x4ed   : > { %2086 = vadd.xlane.f32.xlu1 %v2085_v15  ;;  %v2423_v17 = vsel %vm2043_vm4, %v2385_v14, 0.0 }
 0x4ee   : > { %2424 = vadd.xlane.f32.xlu0 %v2423_v17  ;;  %v2999_v20 = vpop.f32.mrb[6].mxu0  ;;  %v2420_v24 = vsel %vm2043_vm4, %v2384_v18, 0.0 }
 0x4ef   : > { %2049 = vst.msk [vmem:[%s3871_s27 + $0x28] sm:$0xff] %vm2043_vm4, %v2999_v20  ;;  %v2387_v21 = vmul.f32 %v2999_v20, %v2999_v20  ;;  %v1904_v22 = vpop.f32.mrb[7].mxu0  ;;  %v2091_v28 = vsel %vm2043_vm4, %v2999_v20, 0.0 }
 0x4f0   : > { %2048 = vst.msk [vmem:[%s3871_s27 + $0x20] sm:$0xff] %vm2043_vm4, %v1904_v22  ;;  %v2386_v33 = vmul.f32 %v1904_v22, %v1904_v22  ;;  %v2088_v34 = vsel %vm2043_vm4, %v1904_v22, 0.0 }
 0x4f1   : > { %2083 = vadd.xlane.f32.xlu1 %v2082_v19  ;;  %v2429_v23 = vsel %vm2043_vm4, %v2387_v21, 0.0 }
 0x4f2   : > { %2430 = vadd.xlane.f32.xlu0 %v2429_v23  ;;  %v2426_v39 = vsel %vm2043_vm4, %v2386_v33, 0.0 }
 0x4f4   : > { %v3002_v25 = vpop.f32.mrb[8].mxu0 }
 0x4f5   : > { %2421 = vadd.xlane.f32.xlu1 %v2420_v24  ;;  %2051 = vst.msk [vmem:[%s3871_s27 + $0x38] sm:$0xff] %vm2043_vm4, %v3002_v25  ;;  %v2097_v26 = vsel %vm2043_vm4, %v3002_v25, 0.0  ;;  %v1914_v27 = vpop.f32.mrb[9].mxu0  ;;  %v2389_v38 = vmul.f32 %v3002_v25, %v3002_v25 }
 0x4f6   : > { %2098 = vadd.xlane.f32.xlu0 %v2097_v26  ;;  %2050 = vst.msk [vmem:[%s3871_s27 + $0x30] sm:$0xff] %vm2043_vm4, %v1914_v27  ;;  %v2388_v29 = vmul.f32 %v1914_v27, %v1914_v27  ;;  %v2094_v30 = vsel %vm2043_vm4, %v1914_v27, 0.0 }
 0x4f7   : > { %v2435_v42 = vsel %vm2043_vm4, %v2389_v38, 0.0 }
 0x4f8   : > { %v3005_v31 = vpop.f32.mrb[10].mxu0  ;;  %v2432_v35 = vsel %vm2043_vm4, %v2388_v29, 0.0 }
 0x4f9   : > { %2092 = vadd.xlane.f32.xlu1 %v2091_v28  ;;  %2053 = vst.msk [vmem:[%s3871_s27 + $0x48] sm:$0xff] %vm2043_vm4, %v3005_v31  ;;  %v1924_v32 = vpop.f32.mrb[11].mxu0  ;;  %v2391_v40 = vmul.f32 %v3005_v31, %v3005_v31  ;;  %v2103_v41 = vsel %vm2043_vm4, %v3005_v31, 0.0 }
 0x4fa   : > { %2095 = vadd.xlane.f32.xlu0 %v2094_v30  ;;  %2052 = vst.msk [vmem:[%s3871_s27 + $0x40] sm:$0xff] %vm2043_vm4, %v1924_v32  ;;  %v2390_v45 = vmul.f32 %v1924_v32, %v1924_v32  ;;  %v2100_v43 = vsel %vm2043_vm4, %v1924_v32, 0.0 }
 0x4fb   : > { %v2441_v44 = vsel %vm2043_vm4, %v2391_v40, 0.0 }
 0x4fc   : > { %v3008_v36 = vpop.f32.mrb[12].mxu0  ;;  %v2438_v48 = vsel %vm2043_vm4, %v2390_v45, 0.0 }
 0x4fd   : > { %2089 = vadd.xlane.f32.xlu1 %v2088_v34  ;;  %2055 = vst.msk [vmem:[%s3871_s27 + $0x58] sm:$0xff] %vm2043_vm4, %v3008_v36  ;;  %v1934_v37 = vpop.f32.mrb[13].mxu0  ;;  %v2109_v49 = vsel %vm2043_vm4, %v3008_v36, 0.0  ;;  %v2393_v63 = vmul.f32 %v3008_v36, %v3008_v36 }
 0x4fe   : > { %2433 = vadd.xlane.f32.xlu0 %v2432_v35  ;;  %2054 = vst.msk [vmem:[%s3871_s27 + $0x50] sm:$0xff] %vm2043_vm4, %v1934_v37  ;;  %v2106_v53 = vsel %vm2043_vm4, %v1934_v37, 0.0  ;;  %v2392_v2 = vmul.f32 %v1934_v37, %v1934_v37 }
 0x4ff   : > { %v2447_v7 = vsel %vm2043_vm4, %v2393_v63, 0.0 }
 0x500   : > { %v2444_v10 = vsel %vm2043_vm4, %v2392_v2, 0.0 }
 0x501   : > { %2427 = vadd.xlane.f32.xlu1 %v2426_v39 }
 0x502   : > { %2104 = vadd.xlane.f32.xlu0 %v2103_v41 }
 0x505   : > { %2436 = vadd.xlane.f32.xlu1 %v2435_v42 }
 0x506   : > { %2442 = vadd.xlane.f32.xlu0 %v2441_v44 }
 0x507   : > { %v3011_v46 = vpop.f32.mrb[14].mxu0 }
 0x508   : > { %2057 = vst.msk [vmem:[%s3871_s27 + $0x68] sm:$0xff] %vm2043_vm4, %v3011_v46  ;;  %v1944_v47 = vpop.f32.mrb[15].mxu0  ;;  %v2395_v13 = vmul.f32 %v3011_v46, %v3011_v46  ;;  %v2115_v16 = vsel %vm2043_vm4, %v3011_v46, 0.0 }
 0x509   : > { %2101 = vadd.xlane.f32.xlu1 %v2100_v43  ;;  %2056 = vst.msk [vmem:[%s3871_s27 + $0x60] sm:$0xff] %vm2043_vm4, %v1944_v47  ;;  %v2112_v14 = vsel %vm2043_vm4, %v1944_v47, 0.0  ;;  %v2394_v15 = vmul.f32 %v1944_v47, %v1944_v47 }
 0x50a   : > { %v2453_v17 = vsel %vm2043_vm4, %v2395_v13, 0.0 }
 0x50b   : > { %v2450_v18 = vsel %vm2043_vm4, %v2394_v15, 0.0 }
 0x50d   : > { %2439 = vadd.xlane.f32.xlu1 %v2438_v48 }
 0x50f   : > { %v3922_v51 = vpop.f32.mrb[16].mxu0 }
 0x510   : > { %2059 = vst.msk [vmem:[%s3871_s27 + $0x78] sm:$0xff] %vm2043_vm4, %v3922_v51  ;;  %v1954_v52 = vpop.f32.mrb[17].mxu0  ;;  %v2121_v20 = vsel %vm2043_vm4, %v3922_v51, 0.0  ;;  %v2397_v23 = vmul.f32 %v3922_v51, %v3922_v51 }
 0x511   : > { %2110 = vadd.xlane.f32.xlu1 %v2109_v49  ;;  %2058 = vst.msk [vmem:[%s3871_s27 + $0x70] sm:$0xff] %vm2043_vm4, %v1954_v52  ;;  %v2118_v19 = vsel %vm2043_vm4, %v1954_v52, 0.0  ;;  %v2396_v22 = vmul.f32 %v1954_v52, %v1954_v52 }
 0x512   : > { %v2459_v30 = vsel %vm2043_vm4, %v2397_v23, 0.0 }
 0x513   : > { %v3930_v54 = vpop.f32.mrb[18].mxu0  ;;  %v2456_v27 = vsel %vm2043_vm4, %v2396_v22, 0.0 }
 0x514   : > { %2061 = vst.msk [vmem:[%s3871_s27 + $0x88] sm:$0xff] %vm2043_vm4, %v3930_v54  ;;  %v3935_v50 = vpop.f32.mrb[19].mxu0  ;;  %v2127_v33 = vsel %vm2043_vm4, %v3930_v54, 0.0  ;;  %v2399_v39 = vmul.f32 %v3930_v54, %v3930_v54 }
 0x515   : > { %2107 = vadd.xlane.f32.xlu1 %v2106_v53  ;;  %2060 = vst.msk [vmem:[%s3871_s27 + $0x80] sm:$0xff] %vm2043_vm4, %v3935_v50  ;;  %v2124_v34 = vsel %vm2043_vm4, %v3935_v50, 0.0  ;;  %v2398_v40 = vmul.f32 %v3935_v50, %v3935_v50 }
 0x516   : > { %v2465_v42 = vsel %vm2043_vm4, %v2399_v39, 0.0 }
 0x517   : > { %v3940_v55 = vpop.f32.mrb[20].mxu0  ;;  %v2462_v45 = vsel %vm2043_vm4, %v2398_v40, 0.0 }
 0x518   : > { %2063 = vst.msk [vmem:[%s3871_s27 + $0x98] sm:$0xff] %vm2043_vm4, %v3940_v55  ;;  %v3945_v56 = vpop.f32.mrb[21].mxu0  ;;  %v2401_v48 = vmul.f32 %v3940_v55, %v3940_v55  ;;  %v2133_v49 = vsel %vm2043_vm4, %v3940_v55, 0.0 }
 0x519   : > { %2062 = vst.msk [vmem:[%s3871_s27 + $0x90] sm:$0xff] %vm2043_vm4, %v3945_v56  ;;  %v2130_v47 = vsel %vm2043_vm4, %v3945_v56, 0.0  ;;  %v2400_v52 = vmul.f32 %v3945_v56, %v3945_v56 }
 0x51a   : > { %v2471_v53 = vsel %vm2043_vm4, %v2401_v48, 0.0 }
 0x51b   : > { %v3950_v57 = vpop.f32.mrb[22].mxu0 }
 0x51c   : > { %2065 = vst.msk [vmem:[%s3871_s27 + $0xa8] sm:$0xff] %vm2043_vm4, %v3950_v57  ;;  %v3955_v58 = vpop.f32.mrb[23].mxu0  ;;  %v2139_v56 = vsel %vm2043_vm4, %v3950_v57, 0.0  ;;  %v2403_v63 = vmul.f32 %v3950_v57, %v3950_v57 }
 0x51d   : > { %2064 = vst.msk [vmem:[%s3871_s27 + $0xa0] sm:$0xff] %vm2043_vm4, %v3955_v58  ;;  %v2402_v54 = vmul.f32 %v3955_v58, %v3955_v58  ;;  %v2136_v50 = vsel %vm2043_vm4, %v3955_v58, 0.0 }
 0x51f   : > { %v3029_v59 = vpop.f32.mrb[16].mxu1  ;;  %v2474_v55 = vsel %vm2043_vm4, %v2402_v54, 0.0 }
 0x520   : > { %2069 = vst.msk [vmem:[%s3871_s27 + $0xc8] sm:$0xff] %vm2043_vm4, %v3029_v59  ;;  %v2407_v60 = vmul.f32 %v3029_v59, %v3029_v59  ;;  %v2004_v61 = vpop.f32.mrb[17].mxu1  ;;  %v2151_v62 = vsel %vm2043_vm4, %v3029_v59, 0.0 }
 0x521   : > { %2068 = vst.msk [vmem:[%s3871_s27 + $0xc0] sm:$0xff] %vm2043_vm4, %v2004_v61  ;;  %2152 = vadd.xlane.f32.xlu0 %v2151_v62  ;;  %v2148_v0 = vsel %vm2043_vm4, %v2004_v61, 0.0  ;;  %v2406_v5 = vmul.f32 %v2004_v61, %v2004_v61 }
 0x522   : > { %2149 = vadd.xlane.f32.xlu1 %v2148_v0  ;;  %v2489_v3 = vsel %vm2043_vm4, %v2407_v60, 0.0  ;;  %v2468_v60 = vsel %vm2043_vm4, %v2400_v52, 0.0  ;;  %v2205_v0 = vand.u32 127, %v356_v6 }
 0x523   : > { %v3966_v1 = vpop.f32.mrb[24].mxu0  ;;  %v2486_v12 = vsel %vm2043_vm4, %v2406_v5, 0.0 }
 0x524   : > { %2067 = vst.msk [vmem:[%s3871_s27 + $0xb8] sm:$0xff] %vm2043_vm4, %v3966_v1  ;;  %v3972_v4 = vpop.f32.mrb[25].mxu0  ;;  %v2405_v62 = vmul.f32 %v3966_v1, %v3966_v1  ;;  %v2145_v58 = vsel %vm2043_vm4, %v3966_v1, 0.0  ;;  %v2224_v15 = vadd.s32 4294967272, %v2205_v0  ;;  %v2217_v23 = vadd.s32 4294967280, %v2205_v0 }
 0x525   : > { %2490 = vadd.xlane.f32.xlu0 %v2489_v3  ;;  %2066 = vst.msk [vmem:[%s3871_s27 + $0xb0] sm:$0xff] %vm2043_vm4, %v3972_v4  ;;  %v2477_v3 = vsel %vm2043_vm4, %v2403_v63, 0.0  ;;  %v2142_v5 = vsel %vm2043_vm4, %v3972_v4, 0.0  ;;  %v2404_v1 = vmul.f32 %v3972_v4, %v3972_v4 }
 0x526   : > { %2448 = vadd.xlane.f32.xlu1 %v2447_v7  ;;  %v2483_v2 = vsel %vm2043_vm4, %v2405_v62, 0.0  ;;  %v2210_v7 = vadd.s32 4294967288, %v2205_v0  ;;  %v4068_v22 = vsub.s32 %v2224_v15, %v3448_v8 }
 0x527   : > { %v3032_v9 = vpop.f32.mrb[18].mxu1 }
 0x528   : > { %2071 = vst.msk [vmem:[%s3871_s27 + $0xd8] sm:$0xff] %vm2043_vm4, %v3032_v9  ;;  %v2014_v11 = vpop.f32.mrb[19].mxu1  ;;  %v2157_v24 = vsel %vm2043_vm4, %v3032_v9, 0.0  ;;  %v2409_v29 = vmul.f32 %v3032_v9, %v3032_v9  ;;  %v4055_v6 = vsub.s32 %v2210_v7, %v3448_v8  ;;  %v4058_v9 = vsub.s32 %v2205_v0, %v3448_v8 }
 0x529   : > { %2445 = vadd.xlane.f32.xlu0 %v2444_v10  ;;  %2070 = vst.msk [vmem:[%s3871_s27 + $0xd0] sm:$0xff] %vm2043_vm4, %v2014_v11  ;;  %v2154_v21 = vsel %vm2043_vm4, %v2014_v11, 0.0  ;;  %v2408_v26 = vmul.f32 %v2014_v11, %v2014_v11  ;;  %v2480_v11 = vsel %vm2043_vm4, %v2404_v1, 0.0 }
 0x52a   : > { %2487 = vadd.xlane.f32.xlu1 %v2486_v12  ;;  %v2495_v32 = vsel %vm2043_vm4, %v2409_v29, 0.0 }
 0x52b   : > { %v2492_v31 = vsel %vm2043_vm4, %v2408_v26, 0.0 }
 0x52d   : > { %2113 = vadd.xlane.f32.xlu0 %v2112_v14 }
 0x52e   : > { %2116 = vadd.xlane.f32.xlu1 %v2115_v16 }
 0x531   : > { %2454 = vadd.xlane.f32.xlu0 %v2453_v17 }
 0x532   : > { %2451 = vadd.xlane.f32.xlu1 %v2450_v18 }
 0x535   : > { %2119 = vadd.xlane.f32.xlu0 %v2118_v19 }
 0x536   : > { %2122 = vadd.xlane.f32.xlu1 %v2121_v20 }
 0x539   : > { %2155 = vadd.xlane.f32.xlu0 %v2154_v21 }
 0x53a   : > { %2158 = vadd.xlane.f32.xlu1 %v2157_v24 }
 0x53b   : > { %v3035_v25 = vpop.f32.mrb[20].mxu1 }
 0x53c   : > { %2073 = vst.msk [vmem:[%s3871_s27 + $0xe8] sm:$0xff] %vm2043_vm4, %v3035_v25  ;;  %v2024_v28 = vpop.f32.mrb[21].mxu1  ;;  %v2163_v37 = vsel %vm2043_vm4, %v3035_v25, 0.0  ;;  %v2411_v41 = vmul.f32 %v3035_v25, %v3035_v25 }
 0x53d   : > { %2457 = vadd.xlane.f32.xlu0 %v2456_v27  ;;  %2072 = vst.msk [vmem:[%s3871_s27 + $0xe0] sm:$0xff] %vm2043_vm4, %v2024_v28  ;;  %v2160_v38 = vsel %vm2043_vm4, %v2024_v28, 0.0  ;;  %v2410_v44 = vmul.f32 %v2024_v28, %v2024_v28  ;;  %v4073_v27 = vsub.s32 %v2217_v23, %v3448_v8 }
 0x53e   : > { %2460 = vadd.xlane.f32.xlu1 %v2459_v30  ;;  %v2501_v43 = vsel %vm2043_vm4, %v2411_v41, 0.0 }
 0x53f   : > { %v2498_v46 = vsel %vm2043_vm4, %v2410_v44, 0.0 }
 0x541   : > { %2493 = vadd.xlane.f32.xlu0 %v2492_v31 }
 0x542   : > { %2496 = vadd.xlane.f32.xlu1 %v2495_v32 }
 0x543   : > { %v3038_v35 = vpop.f32.mrb[22].mxu1 }
 0x544   : > { %2075 = vst.msk [vmem:[%s3871_s27 + $0xf8] sm:$0xff] %vm2043_vm4, %v3038_v35  ;;  %v2034_v36 = vpop.f32.mrb[23].mxu1  ;;  %v2169_v57 = vsel %vm2043_vm4, %v3038_v35, 0.0  ;;  %v2413_v10 = vmul.f32 %v3038_v35, %v3038_v35 }
 0x545   : > { %2128 = vadd.xlane.f32.xlu0 %v2127_v33  ;;  %2074 = vst.msk [vmem:[%s3871_s27 + $0xf0] sm:$0xff] %vm2043_vm4, %v2034_v36  ;;  %v2166_v51 = vsel %vm2043_vm4, %v2034_v36, 0.0  ;;  %v2412_v59 = vmul.f32 %v2034_v36, %v2034_v36 }
 0x546   : > { %2125 = vadd.xlane.f32.xlu1 %v2124_v34  ;;  %v2507_v16 = vsel %vm2043_vm4, %v2413_v10, 0.0 }
 0x547   : > { %v2504_v61 = vsel %vm2043_vm4, %v2412_v59, 0.0 }
 0x549   : > { %2164 = vadd.xlane.f32.xlu0 %v2163_v37 }
 0x54a   : > { %2161 = vadd.xlane.f32.xlu1 %v2160_v38 }
 0x54d   : > { %2466 = vadd.xlane.f32.xlu0 %v2465_v42 }
 0x54e   : > { %2463 = vadd.xlane.f32.xlu1 %v2462_v45 }
 0x551   : > { %2502 = vadd.xlane.f32.xlu0 %v2501_v43 }
 0x552   : > { %2499 = vadd.xlane.f32.xlu1 %v2498_v46 }
 0x555   : > { %2131 = vadd.xlane.f32.xlu0 %v2130_v47 }
 0x556   : > { %2134 = vadd.xlane.f32.xlu1 %v2133_v49 }
 0x559   : > { %2167 = vadd.xlane.f32.xlu0 %v2166_v51 }
 0x55a   : > { %2472 = vadd.xlane.f32.xlu1 %v2471_v53 }
 0x55d   : > { %2469 = vadd.xlane.f32.xlu0 %v2468_v60 }
 0x55e   : > { %2137 = vadd.xlane.f32.xlu1 %v2136_v50 }
 0x561   : > { %2505 = vadd.xlane.f32.xlu0 %v2504_v61 }
 0x562   : > { %2475 = vadd.xlane.f32.xlu1 %v2474_v55 }
 0x565   : > { %2140 = vadd.xlane.f32.xlu0 %v2139_v56 }
 0x566   : > { %2146 = vadd.xlane.f32.xlu1 %v2145_v58 }
 0x569   : > { %2478 = vadd.xlane.f32.xlu0 %v2477_v3 }
 0x56a   : > { %2484 = vadd.xlane.f32.xlu1 %v2483_v2 }
 0x56d   : > { %2143 = vadd.xlane.f32.xlu0 %v2142_v5 }
 0x56e   : > { %2170 = vadd.xlane.f32.xlu1 %v2169_v57 }
 0x571   : > { %2481 = vadd.xlane.f32.xlu0 %v2480_v11  ;;  %v2081_v12 = vpop.xlane.xlu0 %2080 }
 0x572   : > { %v2078_v13 = vpop.xlane.xlu1 %2077  ;;  %v2214_v14 = vrot.slane %v2081_v12, %v4055_v6 }
 0x573   : > { %v2209_v4 = vrot.slane %v2078_v13, %v4058_v9 }
 0x575   : > { %2508 = vadd.xlane.f32.xlu0 %v2507_v16  ;;  %v2216_v17 = vsel %vm2215_vm5, %v2214_v14, %v2209_v4  ;;  %v2419_v18 = vpop.xlane.xlu0 %2418 }
 0x576   : > { %v2416_v19 = vpop.xlane.xlu1 %2415  ;;  %v2549_v20 = vrot.slane %v2419_v18, %v4055_v6 }
 0x577   : > { %v2545_v21 = vrot.slane %v2416_v19, %v4058_v9 }
 0x579   : > { %v2550_v24 = vsel %vm2215_vm5, %v2549_v20, %v2545_v21 }
 0x57a   : > { %v2087_v25 = vpop.xlane.xlu1 %2086 }
 0x57b   : > { %v2228_v26 = vrot.slane %v2087_v25, %v4068_v22  ;;  %v2425_v28 = vpop.xlane.xlu0 %2424 }
 0x57c   : > { %v2559_v29 = vrot.slane %v2425_v28, %v4068_v22 }
 0x57e   : > { %v2084_v30 = vpop.xlane.xlu1 %2083 }
 0x57f   : > { %v2221_v31 = vrot.slane %v2084_v30, %v4073_v27  ;;  %v2431_v32 = vpop.xlane.xlu0 %2430 }
 0x580   : > { %v2568_v33 = vrot.slane %v2431_v32, %v4055_v6 }
 0x581   : > { %v2223_v34 = vsel %vm2222_vm6, %v2221_v31, %v2216_v17 }
 0x582   : > { %v2230_v35 = vsel %vm2229_vm7, %v2228_v26, %v2223_v34  ;;  %v2422_v36 = vpop.xlane.xlu1 %2421 }
 0x583   : > { %v2554_v37 = vrot.slane %v2422_v36, %v4073_v27  ;;  %v2099_v8 = vpop.xlane.xlu0 %2098 }
 0x584   : > { %v2248_v38 = vrot.slane %v2099_v8, %v4068_v22 }
 0x585   : > { %v2555_v39 = vsel %vm2222_vm6, %v2554_v37, %v2550_v24 }
 0x586   : > { %v2560_v40 = vsel %vm2229_vm7, %v2559_v29, %v2555_v39  ;;  %v2093_v41 = vpop.xlane.xlu1 %2092 }
 0x587   : > { %v2238_v42 = vrot.slane %v2093_v41, %v4055_v6  ;;  %v2096_v44 = vpop.xlane.xlu0 %2095 }
 0x588   : > { %v2243_v45 = vrot.slane %v2096_v44, %v4073_v27 }
 0x58a   : > { %v2090_v43 = vpop.xlane.xlu1 %2089 }
 0x58b   : > { %v2234_v46 = vrot.slane %v2090_v43, %v4058_v9  ;;  %v2434_v47 = vpop.xlane.xlu0 %2433 }
 0x58c   : > { %v2573_v48 = vrot.slane %v2434_v47, %v4073_v27 }
 0x58d   : > { %v2239_v49 = vsel %vm2215_vm5, %v2238_v42, %v2234_v46 }
 0x58e   : > { %v2244_v51 = vsel %vm2222_vm6, %v2243_v45, %v2239_v49  ;;  %v2428_v52 = vpop.xlane.xlu1 %2427 }
 0x58f   : > { %v2249_v53 = vsel %vm2229_vm7, %v2248_v38, %v2244_v51  ;;  %v2564_v54 = vrot.slane %v2428_v52, %v4058_v9  ;;  %v2105_v50 = vpop.xlane.xlu0 %2104 }
 0x590   : > { %v2365_v59 = vsel %vm2364_vm8, %v2249_v53, %v2230_v35  ;;  %v2257_v60 = vrot.slane %v2105_v50, %v4055_v6 }
 0x591   : > { %v2569_v55 = vsel %vm2215_vm5, %v2568_v33, %v2564_v54 }
 0x592   : > { %v2574_v61 = vsel %vm2222_vm6, %v2573_v48, %v2569_v55  ;;  %v2437_v56 = vpop.xlane.xlu1 %2436 }
 0x593   : > { %v2578_v62 = vrot.slane %v2437_v56, %v4068_v22  ;;  %v2443_v58 = vpop.xlane.xlu0 %2442 }
 0x594   : > { %v2587_v63 = vrot.slane %v2443_v58, %v4055_v6 }
 0x595   : > { %v2579_v0 = vsel %vm2229_vm7, %v2578_v62, %v2574_v61 }
 0x596   : > { %v2694_v2 = vsel %vm2364_vm8, %v2579_v0, %v2560_v40  ;;  %v2102_v3 = vpop.xlane.xlu1 %2101 }
 0x597   : > { %v2253_v5 = vrot.slane %v2102_v3, %v4058_v9 }
 0x599   : > { %v2258_v7 = vsel %vm2215_vm5, %v2257_v60, %v2253_v5 }
 0x59a   : > { %v2440_v1 = vpop.xlane.xlu1 %2439 }
 0x59b   : > { %v2583_v57 = vrot.slane %v2440_v1, %v4058_v9 }
 0x59d   : > { %v2588_v10 = vsel %vm2215_vm5, %v2587_v63, %v2583_v57 }
 0x59e   : > { %v2111_v11 = vpop.xlane.xlu1 %2110 }
 0x59f   : > { %v2267_v12 = vrot.slane %v2111_v11, %v4068_v22 }
 0x5a2   : > { %v2108_v13 = vpop.xlane.xlu1 %2107 }
 0x5a3   : > { %v2262_v14 = vrot.slane %v2108_v13, %v4073_v27 }
 0x5a5   : > { %v2263_v4 = vsel %vm2222_vm6, %v2262_v14, %v2258_v7 }
 0x5a6   : > { %v2268_v15 = vsel %vm2229_vm7, %v2267_v12, %v2263_v4 }
 0x5a7   : > { %v2367_v16 = vsel %vm2366_vm9, %v2268_v15, %v2365_v59 }
 0x5ae   : > { %v2153_v17 = vpop.xlane.xlu0 %2152 }
 0x5af   : > { %v2333_v18 = vrot.slane %v2153_v17, %v4055_v6  ;;  %v2150_v19 = vpop.xlane.xlu1 %2149 }
 0x5b0   : > { %v2329_v20 = vrot.slane %v2150_v19, %v4058_v9 }
 0x5b2   : > { %v2334_v21 = vsel %vm2215_vm5, %v2333_v18, %v2329_v20  ;;  %v2491_v23 = vpop.xlane.xlu0 %2490 }
 0x5b3   : > { %v2663_v24 = vrot.slane %v2491_v23, %v4055_v6  ;;  %v2449_v25 = vpop.xlane.xlu1 %2448 }
 0x5b4   : > { %v2597_v26 = vrot.slane %v2449_v25, %v4068_v22 }
 0x5b6   : > { %v2446_v28 = vpop.xlane.xlu0 %2445 }
 0x5b7   : > { %v2592_v29 = vrot.slane %v2446_v28, %v4073_v27  ;;  %v2488_v30 = vpop.xlane.xlu1 %2487 }
 0x5b8   : > { %v2659_v31 = vrot.slane %v2488_v30, %v4058_v9 }
 0x5b9   : > { %v2593_v32 = vsel %vm2222_vm6, %v2592_v29, %v2588_v10 }
 0x5ba   : > { %v2598_v33 = vsel %vm2229_vm7, %v2597_v26, %v2593_v32  ;;  %v2664_v34 = vsel %vm2215_vm5, %v2663_v24, %v2659_v31  ;;  %v2114_v35 = vpop.xlane.xlu0 %2113 }
 0x5bb   : > { %v2117_v36 = vpop.xlane.xlu1 %2116  ;;  %v2695_v37 = vsel %vm2366_vm9, %v2598_v33, %v2694_v2  ;;  %v2272_v39 = vrot.slane %v2114_v35, %v4058_v9 }
 0x5bc   : > { %v2276_v40 = vrot.slane %v2117_v36, %v4055_v6 }
 0x5be   : > { %v2455_v8 = vpop.xlane.xlu0 %2454  ;;  %v2277_v45 = vsel %vm2215_vm5, %v2276_v40, %v2272_v39 }
 0x5bf   : > { %v2452_v38 = vpop.xlane.xlu1 %2451  ;;  %v2606_v53 = vrot.slane %v2455_v8, %v4055_v6 }
 0x5c0   : > { %v2602_v54 = vrot.slane %v2452_v38, %v4058_v9 }
 0x5c2   : > { %v2120_v41 = vpop.xlane.xlu0 %2119  ;;  %v2607_v62 = vsel %vm2215_vm5, %v2606_v53, %v2602_v54 }
 0x5c3   : > { %v2281_v42 = vrot.slane %v2120_v41, %v4073_v27  ;;  %v2123_v44 = vpop.xlane.xlu1 %2122 }
 0x5c4   : > { %v2286_v43 = vrot.slane %v2123_v44, %v4068_v22 }
 0x5c5   : > { %v2282_v46 = vsel %vm2222_vm6, %v2281_v42, %v2277_v45 }
 0x5c6   : > { %v2287_v47 = vsel %vm2229_vm7, %v2286_v43, %v2282_v46  ;;  %v2156_v48 = vpop.xlane.xlu0 %2155 }
 0x5c7   : > { %v2369_v49 = vsel %vm2368_vm10, %v2287_v47, %v2367_v16  ;;  %v2338_v51 = vrot.slane %v2156_v48, %v4073_v27  ;;  %v2159_v52 = vpop.xlane.xlu1 %2158 }
 0x5c8   : > { %v2343_v50 = vrot.slane %v2159_v52, %v4068_v22 }
 0x5c9   : > { %v2339_v59 = vsel %vm2222_vm6, %v2338_v51, %v2334_v21 }
 0x5ca   : > { %v4132_v60 = vsel %vm2229_vm7, %v2343_v50, %v2339_v59  ;;  %v2458_v55 = vpop.xlane.xlu0 %2457 }
 0x5cb   : > { %v2611_v61 = vrot.slane %v2458_v55, %v4073_v27  ;;  %v2461_v56 = vpop.xlane.xlu1 %2460 }
 0x5cc   : > { %v2616_v58 = vrot.slane %v2461_v56, %v4068_v22 }
 0x5cd   : > { %v2612_v63 = vsel %vm2222_vm6, %v2611_v61, %v2607_v62 }
 0x5ce   : > { %v2617_v0 = vsel %vm2229_vm7, %v2616_v58, %v2612_v63  ;;  %v2494_v2 = vpop.xlane.xlu0 %2493 }
 0x5cf   : > { %v2696_v3 = vsel %vm2368_vm10, %v2617_v0, %v2695_v37  ;;  %v2668_v5 = vrot.slane %v2494_v2, %v4073_v27  ;;  %v2497_v7 = vpop.xlane.xlu1 %2496 }
 0x5d0   : > { %v2673_v1 = vrot.slane %v2497_v7, %v4068_v22 }
 0x5d1   : > { %v2669_v57 = vsel %vm2222_vm6, %v2668_v5, %v2664_v34 }
 0x5d2   : > { %v4144_v10 = vsel %vm2229_vm7, %v2673_v1, %v2669_v57  ;;  %v2129_v11 = vpop.xlane.xlu0 %2128 }
 0x5d3   : > { %v2126_v12 = vpop.xlane.xlu1 %2125  ;;  %v2295_v18 = vrot.slane %v2129_v11, %v4055_v6 }
 0x5d4   : > { %v2291_v19 = vrot.slane %v2126_v12, %v4058_v9 }
 0x5d6   : > { %v2165_v13 = vpop.xlane.xlu0 %2164  ;;  %v2296_v24 = vsel %vm2215_vm5, %v2295_v18, %v2291_v19 }
 0x5d7   : > { %v2162_v14 = vpop.xlane.xlu1 %2161 }
 0x5d8   : > { %v2348_v51 = vrot.slane %v2162_v14, %v4058_v9 }
 0x5da   : > { %v2467_v4 = vpop.xlane.xlu0 %2466 }
 0x5db   : > { %v2464_v15 = vpop.xlane.xlu1 %2463  ;;  %v2625_v32 = vrot.slane %v2467_v4, %v4055_v6 }
 0x5dc   : > { %v2621_v33 = vrot.slane %v2464_v15, %v4058_v9 }
 0x5de   : > { %v4146_v16 = vpop.xlane.xlu0 %2502  ;;  %v2626_v37 = vsel %vm2215_vm5, %v2625_v32, %v2621_v33 }
 0x5df   : > { %v4148_v17 = vpop.xlane.xlu1 %2499  ;;  %v2682_v63 = vrot.slane %v4146_v16, %v4055_v6 }
 0x5e0   : > { %v2678_v0 = vrot.slane %v4148_v17, %v4058_v9 }
 0x5e2   : > { %v2132_v20 = vpop.xlane.xlu0 %2131  ;;  %v2683_v17 = vsel %vm2215_vm5, %v2682_v63, %v2678_v0 }
 0x5e3   : > { %v2300_v21 = vrot.slane %v2132_v20, %v4073_v27  ;;  %v2135_v23 = vpop.xlane.xlu1 %2134 }
 0x5e4   : > { %v2305_v25 = vrot.slane %v2135_v23, %v4068_v22 }
 0x5e5   : > { %v2301_v26 = vsel %vm2222_vm6, %v2300_v21, %v2296_v24 }
 0x5e6   : > { %v2306_v28 = vsel %vm2229_vm7, %v2305_v25, %v2301_v26  ;;  %v2168_v29 = vpop.xlane.xlu0 %2167 }
 0x5e7   : > { %v2371_v30 = vsel %vm2370_vm11, %v2306_v28, %v2369_v49  ;;  %v2473_v31 = vpop.xlane.xlu1 %2472  ;;  %v2352_v49 = vrot.slane %v2165_v13, %v4055_v6  ;;  %v2357_v53 = vrot.slane %v2168_v29, %v4073_v27 }
 0x5e8   : > { %v2635_v8 = vrot.slane %v2473_v31, %v4068_v22 }
 0x5e9   : > { %v2353_v62 = vsel %vm2215_vm5, %v2352_v49, %v2348_v51 }
 0x5ea   : > { %v2470_v34 = vpop.xlane.xlu0 %2469  ;;  %v2358_v7 = vsel %vm2222_vm6, %v2357_v53, %v2353_v62 }
 0x5eb   : > { %v2630_v35 = vrot.slane %v2470_v34, %v4073_v27  ;;  %v2138_v36 = vpop.xlane.xlu1 %2137 }
 0x5ec   : > { %v2310_v47 = vrot.slane %v2138_v36, %v4058_v9 }
 0x5ed   : > { %v2631_v38 = vsel %vm2222_vm6, %v2630_v35, %v2626_v37 }
 0x5ee   : > { %v2636_v39 = vsel %vm2229_vm7, %v2635_v8, %v2631_v38  ;;  %v2506_v40 = vpop.xlane.xlu0 %2505 }
 0x5ef   : > { %v2476_v41 = vpop.xlane.xlu1 %2475  ;;  %v2697_v42 = vsel %vm2370_vm11, %v2636_v39, %v2696_v3  ;;  %v2687_v1 = vrot.slane %v2506_v40, %v4073_v27 }
 0x5f0   : > { %v2640_v2 = vrot.slane %v2476_v41, %v4058_v9 }
 0x5f1   : > { %v2688_v19 = vsel %vm2222_vm6, %v2687_v1, %v2683_v17 }
 0x5f2   : > { %v2141_v44 = vpop.xlane.xlu0 %2140 }
 0x5f3   : > { %v2147_v45 = vpop.xlane.xlu1 %2146  ;;  %v2314_v48 = vrot.slane %v2141_v44, %v4055_v6 }
 0x5f4   : > { %v2324_v55 = vrot.slane %v2147_v45, %v4068_v22 }
 0x5f5   : > { %v2315_v59 = vsel %vm2215_vm5, %v2314_v48, %v2310_v47 }
 0x5f6   : > { %v2479_v43 = vpop.xlane.xlu0 %2478 }
 0x5f7   : > { %v2485_v46 = vpop.xlane.xlu1 %2484  ;;  %v2644_v61 = vrot.slane %v2479_v43, %v4055_v6 }
 0x5f8   : > { %v2654_v6 = vrot.slane %v2485_v46, %v4068_v22 }
 0x5f9   : > { %v2645_v12 = vsel %vm2215_vm5, %v2644_v61, %v2640_v2 }
 0x5fa   : > { %v2144_v52 = vpop.xlane.xlu0 %2143 }
 0x5fb   : > { %v2319_v54 = vrot.slane %v2144_v52, %v4073_v27  ;;  %v2171_v50 = vpop.xlane.xlu1 %2170 }
 0x5fc   : > { %v2362_v56 = vrot.slane %v2171_v50, %v4068_v22 }
 0x5fd   : > { %v2320_v58 = vsel %vm2222_vm6, %v2319_v54, %v2315_v59 }
 0x5fe   : > { %v2325_v3 = vsel %vm2229_vm7, %v2324_v55, %v2320_v58  ;;  %v2482_v5 = vpop.xlane.xlu0 %2481  ;;  %v2363_v13 = vsel %vm2229_vm7, %v2362_v56, %v2358_v7 }
 0x5ff   : > { %v2649_v57 = vrot.slane %v2482_v5, %v4073_v27  ;;  %v2373_v11 = vsel %vm2372_vm12, %v2325_v3, %v2371_v30 }
 0x600   : > { %v2375_v9 = vsel %vm2374_vm13, %v4132_v60, %v2373_v11 }
 0x601   : > { %v2650_v14 = vsel %vm2222_vm6, %v2649_v57, %v2645_v12  ;;  %v2377_v4 = vsel %vm2376_vm14, %v2363_v13, %v2375_v9 }
 0x602   : > { %v2655_v15 = vsel %vm2229_vm7, %v2654_v6, %v2650_v14  ;;  %v2509_v27 = vpop.xlane.xlu0 %2508  ;;  %v2379_v16 = vsel %vm2043_vm4, %v2377_v4, 0.0 }
 0x603   : > { %v2692_v18 = vrot.slane %v2509_v27, %v4068_v22  ;;  %2380 = vadd.xlane.f32.xlu1 %v2379_v16  ;;  %v2698_v60 = vsel %vm2372_vm12, %v2655_v15, %v2697_v42 }
 0x604   : > { %v2699_v20 = vsel %vm2374_vm13, %v4144_v10, %v2698_v60 }
 0x605   : > { %v2693_v21 = vsel %vm2229_vm7, %v2692_v18, %v2688_v19 }
 0x606   : > { %v2700_v23 = vsel %vm2376_vm14, %v2693_v21, %v2699_v20 }
 0x607   : > { %v2702_v24 = vsel %vm2043_vm4, %v2700_v23, 0.0 }
 0x608   : > { %2703 = vadd.xlane.f32.xlu0 %v2702_v24 }
 0x609   : > { %3191 = shalt.err (!%p3188_p7)
}
 0x60a   : > { %s3192_s13 = scalar_lea.hbm %s4210_s6, 4096  ;;  %s3196_s23 = scalar_lea.hbm %s4266_s4, 8192 }
 0x60b   : > { %p3193_p9 = scmp.ne.s32.totalorder %s4210_s6, %s3192_s13  ;;  %p3197_p0 = scmp.lt.u32.totalorder %s4210_s6, %s4266_s4 }
 0x60c   : > { %p3198_p1 = scmp.lt.u32.totalorder %s3196_s23, %s3192_s13  ;;  %p3200_p4 = scmp.lt.u32.totalorder %s3192_s13, %s4210_s6 }
 0x60d   : > { %p3194_p2 = pnand %p3193_p9, %p3387_p12 }
 0x60e   : > { %p3199_p11 = por %p3198_p1, %p3197_p0 }
 0x60f   : > { %p3195_p5 = pneg %p3194_p2 }
 0x610   : > { %p3201_p6 = por %p3200_p4, %p3199_p11 }
 0x612   : > { %p3202_p8 = pnand %p3201_p6, %p3195_p5 }
 0x614   : > { %3205 = shalt.err (!%p3202_p8)
}
 0x615   : > { %s3264_s14 = smov 128   ;;  %s3265_s24 = smov 8   ;;  %vm2705_vm15 = vcmask 7168   ;;  %vm2707_vm0 = vcmask 15360  }
 0x616   : > { %3055 = dma.vmem_to_hbm [thread:$0]  (%p3387_p12), %s4213_s7, 4096, %s4210_s6, %s2710_s15, %s3264_s14, %s3264_s14, %s3265_s24  }
 0x617   : > { %p263_p10 = scmp.lt.s32.totalorder %s3317_s22, 1 }
 0x619   : > { %s4289_s22 = smov (!%p263_p10, %s3317_s22), 1 }
 0x61a   : > { %s2848_s11 = sshll.u32 %s4289_s22, 3 }
 0x61b   : > { %s266_s29 = scalar_lea.vmem %s4267_s5, %s2848_s11 }
 0x690   : > { %v2381_v22 = vpop.xlane.xlu1 %2380 }
 0x695   : > { %v2704_v10 = vpop.xlane.xlu0 %2703 }
 0x696   : > { %v2706_v25 = vsel %vm2705_vm15, %v2381_v22, %v2704_v10 }
 0x697   : > { %2708 = vst.msk [vmem:[%s266_s29] sm:$0xff] %vm2707_vm0, %v2706_v25 }
 0x698 PF: > { %s2745_s9 = sand.u32 1, %s3236_s18   ;;  %p4282_p13 = scmp.ne.s32.totalorder %s4272_s25, 0 }
 0x699   : > { %p4283_p12 = scmp.ge.s32.totalorder %s3248_s21, 2  ;;  %s2746_s16 = scalar_lea.sflag [#allocation5], %s2745_s9 }
 0x69b   : > { %p3066_p3 = pnand %p4283_p12, %p4282_p13 }
 0x69d   : > { %3231 = dma.done.wait (!%p3066_p3), %s2746_s16, 4096  }
 0x69e   : > { %3233 = vsyncadd (!%p3066_p3), %s2746_s16, 4294963200  ;;  %p20_p7 = scmp.ge.s32.totalorder %s3352_s30, 4   ;;  %s4284_s18 = smov %s3240_s19 }
 0x69f   : > { %s4285_s19 = smov %s3244_s20  ;;  %s4286_s20 = smov %s3383_s8 }
 0x6a0   : > { %s4287_s21 = smov %s3352_s30  ;;  %22 = sbr.rel (!%p20_p7) target bundleno = 6 (0x6), region = 97 }
 0x6a7   :  { %2758 = vsyncpa [#allocation4], 1 }
 0x6a8   :  { %2760 = vsyncpa [#allocation4 + $0x1], 1 }
 0x6a9   :  { %2761 = vsyncpa [#allocation7], 1 }
 0x6aa   :  { %2762 = vsyncpa [#allocation5], 1 }
 0x6ab   :  { %2764 = vsyncpa [#allocation5 + $0x1], 1 }

</bundles_post_ra>
